<compile_context>
chip_gen: v6e
topology: v6e:2x2x1
jax: 0.10.0
libtpu: 0.0.40
codegen_flags: <defaults>
</compile_context>

<pallas_src>
import functools

import jax
import jax.numpy as jnp
from jax.experimental import pallas as pl
from jax.experimental.pallas import tpu as pltpu

HEADS = 4                      # GraphNeuralNetwork.heads
_MXU_DTYPE = jnp.bfloat16      # MXU operand dtype; accumulation stays f32


def _vmem_limit_bytes():
    """Hardware-adaptive VMEM budget (v5e/v6e: 128 MiB, v7x: 64 MiB)."""
    try:
        cap = int(pltpu.get_tpu_info().vmem_capacity_bytes)
    except Exception:
        cap = 64 * 1024 * 1024          # conservative fallback (v7x physical)
    return (cap * 3) // 4


_VMEM_LIMIT = _vmem_limit_bytes()


def _full_spec(shape):
    """BlockSpec covering the whole array regardless of grid rank."""
    nd = len(shape)
    return pl.BlockSpec(shape, lambda *_: (0,) * nd)


def _choose_tile_rows(n, hc, ed, vmem_budget_bytes=None):
    """Largest row tile (multiple of 8, dividing n) whose per-step working set
    (double-buffered mask/edge tiles + f32 [T, N, HC] intermediates) fits the
    VMEM budget."""
    if vmem_budget_bytes is None:
        vmem_budget_bytes = _VMEM_LIMIT // 2
    per_row = 4 * n * (2 * (1 + ed) + 5 * hc)
    cap = max(8, vmem_budget_bytes // max(per_row, 1))
    if cap >= n:
        return n
    t = (cap // 8) * 8
    while t >= 8:
        if n % t == 0:
            return t
        t -= 8
    # TODO(synk): ragged last tile would need masked stores; fall back to 1 block
    return n


# --------------------------------------------------------------------------
# GATv2Conv layer kernel (heads=4, concat=True, negative_slope=0.2, edge_dim)
# fused with the ReLU (+ optional LayerNorm) epilogue.
# Grid: one step per tile of target-node rows.
# --------------------------------------------------------------------------
def gatv2_kernel(x_ref, mask_ref, eattr_ref, wl_ref, bl_ref, wr_ref, br_ref,
                 we_ref, attx_ref, bias_ref, gamma_ref, beta_ref, *out_refs,
                 tile_rows, apply_ln, emit_raw):
    n_src = x_ref.shape[0]
    hc = wl_ref.shape[1]
    ed = eattr_ref.shape[2]
    t = tile_rows
    r0 = pl.multiple_of(pl.program_id(0) * t, t)

    x_all = x_ref[...]                                           # [N, Fin]
    # lin_l over all source nodes (needed by every target tile)
    xl = jnp.dot(x_all.astype(_MXU_DTYPE), wl_ref[...].astype(_MXU_DTYPE),
                 preferred_element_type=jnp.float32) + bl_ref[...]   # [N, HC]
    # lin_r over this tile of target rows only
    x_t = x_ref[pl.ds(r0, t), :]                                 # [T, Fin]
    xr = jnp.dot(x_t.astype(_MXU_DTYPE), wr_ref[...].astype(_MXU_DTYPE),
                 preferred_element_type=jnp.float32) + br_ref[...]   # [T, HC]
    # lin_edge: ONE fused matmul for all heads (hoisted out of any head loop)
    e2 = eattr_ref[...].reshape(t * n_src, ed)
    e_all = jnp.dot(e2.astype(_MXU_DTYPE), we_ref[...].astype(_MXU_DTYPE),
                    preferred_element_type=jnp.float32).reshape(t, n_src, hc)

    # GATv2: z = leaky_relu(x_l[src] + x_r[dst] + lin_edge(e), 0.2)
    z = xl[None, :, :] + xr[:, None, :] + e_all                  # [T, N, HC]
    z = jnp.where(z > 0, z, 0.2 * z)

    # Attention logits for all heads via a single MXU matmul against the
    # block-diagonal expanded att matrix; logits come out replicated across
    # each head's C channels, so they directly drive the per-channel alpha.
    s = jnp.dot(z.reshape(t * n_src, hc).astype(_MXU_DTYPE),
                attx_ref[...].astype(_MXU_DTYPE),
                preferred_element_type=jnp.float32).reshape(t, n_src, hc)

    mask3 = mask_ref[...][:, :, None]                            # [T, N, 1]
    s = jnp.where(mask3 > 0, s, -1e30)                           # finite sentinel
    m = jnp.max(s, axis=1, keepdims=True)                        # [T, 1, HC]
    p = jnp.where(mask3 > 0, jnp.exp(s - m), 0.0)
    denom = jnp.sum(p, axis=1, keepdims=True)
    alpha = p * pl.reciprocal(jnp.maximum(denom, 1e-20), approx=True)

    # Weighted aggregation over sources (alpha already head-broadcast over C).
    raw = jnp.sum(alpha * xl[None, :, :], axis=1) + bias_ref[...]    # [T, HC]

    # Fused epilogue: ReLU -> dropout(eval=id) [-> LayerNorm]
    post = jnp.maximum(raw, 0.0)
    if apply_ln:
        mu = jnp.mean(post, axis=-1, keepdims=True)
        var = jnp.mean(jnp.square(post - mu), axis=-1, keepdims=True)
        post = (post - mu) * jax.lax.rsqrt(var + 1e-5) * gamma_ref[...] \
               + beta_ref[...]

    if emit_raw:
        raw_ref, post_ref = out_refs
        raw_ref[...] = raw                     # pre-activation `embedding`
    else:
        (post_ref,) = out_refs
    post_ref[...] = post                       # single lane-dense store


def gatv2_layer(x, p, mask, eattr_dense, ln, *, heads, out_ch,
                emit_raw=False, tile_rows=None):
    n, fin = x.shape
    hc = heads * out_ch
    ed = eattr_dense.shape[-1]
    t = _choose_tile_rows(n, hc, ed) if tile_rows is None else tile_rows
    assert n % t == 0 and (t % 8 == 0 or t == n)
    grid = (n // t,)

    # Block-diagonal expanded attention matrix: attx[h*C+c, h*C+c'] = att[h, c]
    att = p['att'].astype(jnp.float32)                           # [H, C]
    eye = jnp.eye(heads, dtype=jnp.float32)
    attx = att[:, :, None, None] * eye[:, None, :, None]         # [H, C, H, 1]
    attx = jnp.broadcast_to(attx, (heads, out_ch, heads, out_ch)).reshape(hc, hc)

    apply_ln = ln is not None
    gamma = ln['gamma'] if apply_ln else jnp.ones((1, hc), jnp.float32)
    beta = ln['beta'] if apply_ln else jnp.zeros((1, hc), jnp.float32)

    args = (x, mask, eattr_dense, p['wl'], p['bl'], p['wr'], p['br'], p['we'],
            attx, p['bias'], gamma, beta)
    in_specs = [
        pl.BlockSpec((n, fin), lambda i: (0, 0)),        # x: full (sources)
        pl.BlockSpec((t, n), lambda i: (i, 0)),          # mask: row tile
        pl.BlockSpec((t, n, ed), lambda i: (i, 0, 0)),   # edge attr: row tile
    ] + [_full_spec(a.shape) for a in args[3:]]          # weights: full

    out_block = pl.BlockSpec((t, hc), lambda i: (i, 0))
    if emit_raw:
        out_specs = (out_block, out_block)
        out_shape = (jax.ShapeDtypeStruct((n, hc), jnp.float32),
                     jax.ShapeDtypeStruct((n, hc), jnp.float32))
    else:
        out_specs = out_block
        out_shape = jax.ShapeDtypeStruct((n, hc), jnp.float32)

    cost = pl.CostEstimate(
        flops=int(2 * n * n * hc * (ed + 2) + 6 * n * fin * hc),
        transcendentals=int(n * n * hc),
        bytes_accessed=int(4 * (n * n * (1 + ed) + n * (fin + 3 * hc)
                                + 2 * fin * hc + ed * hc + hc * hc)),
    )

    kernel = functools.partial(gatv2_kernel, tile_rows=t,
                               apply_ln=apply_ln, emit_raw=emit_raw)
    return pl.pallas_call(
        kernel,
        grid=grid,
        in_specs=in_specs,
        out_specs=out_specs,
        out_shape=out_shape,
        compiler_params=pltpu.CompilerParams(
            dimension_semantics=("parallel",),
            vmem_limit_bytes=_VMEM_LIMIT,
        ),
        cost_estimate=cost,
    )(*args)


# --------------------------------------------------------------------------
# global_max_pool + post_processing MLP kernel
# --------------------------------------------------------------------------
def pool_mlp_kernel(x_ref, seg_ref, w1, b1, w2, b2, w3, b3, w4, b4, out_ref):
    x = x_ref[...]                                               # [N, D]
    seg = seg_ref[...]                                           # [G, N]
    masked = jnp.where(seg[:, :, None] > 0, x[None, :, :], -1e30)
    pooled = jnp.max(masked, axis=1)                             # [G, D]
    cnt = jnp.sum(seg, axis=1, keepdims=True)
    pooled = jnp.where(cnt > 0, pooled, 0.0)   # empty graphs pool to 0, not -1e30

    def dense(h, w, b):
        return jnp.dot(h.astype(_MXU_DTYPE), w[...].astype(_MXU_DTYPE),
                       preferred_element_type=jnp.float32) + b[...]

    h = jnp.maximum(dense(pooled, w1, b1), 0.0)
    h = jnp.maximum(dense(h, w2, b2), 0.0)
    h = jnp.maximum(dense(h, w3, b3), 0.0)
    out_ref[...] = dense(h, w4, b4)


def pool_mlp(x, seg, mlp, output_dim):
    num_graphs, n = seg.shape
    d = x.shape[1]
    hid = mlp['w1'].shape[1]
    args = (x, seg, mlp['w1'], mlp['b1'], mlp['w2'], mlp['b2'],
            mlp['w3'], mlp['b3'], mlp['w4'], mlp['b4'])
    cost = pl.CostEstimate(
        flops=int(2 * num_graphs * (d * hid + 2 * hid * hid + hid * output_dim)
                  + num_graphs * n * d),
        transcendentals=0,
        bytes_accessed=int(4 * (n * d + num_graphs * n + d * hid
                                + 2 * hid * hid + hid * output_dim
                                + num_graphs * output_dim)),
    )
    return pl.pallas_call(
        pool_mlp_kernel,
        grid=(1,),
        in_specs=[_full_spec(a.shape) for a in args],
        out_specs=_full_spec((num_graphs, output_dim)),
        out_shape=jax.ShapeDtypeStruct((num_graphs, output_dim), jnp.float32),
        compiler_params=pltpu.CompilerParams(vmem_limit_bytes=_VMEM_LIMIT),
        cost_estimate=cost,
    )(*args)


# --------------------------------------------------------------------------
# Glue: sparse graph -> dense mask / edge-attr (with GATv2 default self loops)
# --------------------------------------------------------------------------
def densify_edges(edge_index, edge_attr, num_nodes):
    # TODO(synk): .at[dst, src].set collapses duplicate/parallel edges
    #             (last write wins) -- fine for simple graphs.
    src, dst = edge_index[0], edge_index[1]
    n = num_nodes
    ed = edge_attr.shape[1]
    mask = jnp.zeros((n, n), jnp.float32).at[dst, src].set(1.0)
    dense = jnp.zeros((n, n, ed), jnp.float32).at[dst, src].set(edge_attr)
    # add_self_loops(fill_value='mean'): mean of incoming edge attrs per target
    deg = jnp.sum(mask, axis=1, keepdims=True)
    loop_attr = jnp.sum(dense, axis=1) / jnp.maximum(deg, 1.0)
    idx = jnp.arange(n)
    mask = mask.at[idx, idx].set(1.0)
    dense = dense.at[idx, idx].set(loop_attr)
    return mask, dense


# --------------------------------------------------------------------------
# Parameters (deterministic init)
# --------------------------------------------------------------------------
def init_params(key, input_dim, hidden_dim, output_dim, edge_dims):
    hc = hidden_dim * HEADS
    keys = iter(jax.random.split(key, 40))

    def dense(shape):
        return jax.random.normal(next(keys), shape, jnp.float32) * 0.1

    params = {'conv': [], 'ln': [], 'mlp': {}}
    in_dims = [input_dim, hc, hc]
    for fin in in_dims:
        params['conv'].append(dict(
            wl=dense((fin, hc)), bl=dense((1, hc)),
            wr=dense((fin, hc)), br=dense((1, hc)),
            we=dense((edge_dims, hc)),
            att=dense((HEADS, hidden_dim)),
            bias=dense((1, hc)),
        ))
    for _ in range(2):
        params['ln'].append(dict(gamma=jnp.ones((1, hc), jnp.float32),
                                 beta=jnp.zeros((1, hc), jnp.float32)))
    params['mlp'] = dict(
        w1=dense((hc, hidden_dim)), b1=dense((1, hidden_dim)),
        w2=dense((hidden_dim, hidden_dim)), b2=dense((1, hidden_dim)),
        w3=dense((hidden_dim, hidden_dim)), b3=dense((1, hidden_dim)),
        w4=dense((hidden_dim, output_dim)), b4=dense((1, output_dim)),
    )
    return params


# --------------------------------------------------------------------------
# Full forward pass (mirrors GraphNeuralNetwork.forward, eval mode)
# --------------------------------------------------------------------------
def gnn_forward(params, x, edge_index, edge_attr, batch, num_graphs, hidden_dim,
                output_dim, tile_rows=None):
    n = x.shape[0]
    mask, eattr_dense = densify_edges(edge_index, edge_attr, n)
    h = x
    embedding = None
    for i in range(3):
        last = (i == 2)
        out = gatv2_layer(h, params['conv'][i], mask, eattr_dense,
                          params['ln'][i] if not last else None,
                          heads=HEADS, out_ch=hidden_dim,
                          emit_raw=last, tile_rows=tile_rows)
        if last:
            embedding, h = out      # (pre-activation embedding, relu'd output)
        else:
            h = out                 # relu -> dropout(id) -> LayerNorm (fused)
    seg = (batch[None, :] == jnp.arange(num_graphs)[:, None]).astype(jnp.float32)
    out = pool_mlp(h, seg, params['mlp'], output_dim)  # global_max_pool + MLP
    return embedding, out


if __name__ == "__main__":
    key = jax.random.PRNGKey(0)
    N, G = 16, 2                      # 16 nodes, 2 graphs of 8 nodes each
    input_dim, hidden_dim, output_dim, edge_dims = 4, 8, 1, 3

    k1, k2, k3 = jax.random.split(key, 3)
    x = jax.random.normal(k1, (N, input_dim), jnp.float32)

    # bidirectional ring inside each graph (no self loops, no duplicate edges)
    per = N // G
    srcs, dsts = [], []
    for g in range(G):
        base = g * per
        for k in range(per):
            srcs += [base + k, base + (k + 1) % per]
            dsts += [base + (k + 1) % per, base + k]
    edge_index = jnp.array([srcs, dsts], dtype=jnp.int32)        # [2, E]
    E = edge_index.shape[1]
    edge_attr = jax.random.normal(k2, (E, edge_dims), jnp.float32)
    batch = jnp.repeat(jnp.arange(G, dtype=jnp.int32), per)

    params = init_params(k3, input_dim, hidden_dim, output_dim, edge_dims)

    # tile_rows=8 forces a 2-step row-tiled grid even at this toy size so the
    # tiled/pipelined path is exercised (auto-chooser would pick 16 here).
    embedding, out = gnn_forward(params, x, edge_index, edge_attr, batch, G,
                                 hidden_dim, output_dim, tile_rows=8)
    embedding, out = jax.block_until_ready((embedding, out))

    assert embedding.shape == (N, hidden_dim * HEADS)
    assert out.shape == (G, output_dim)
    assert bool(jnp.all(jnp.isfinite(embedding))) and bool(jnp.all(jnp.isfinite(out)))
    print("KERNEL_OK")
</pallas_src>

<mosaic_0001>
module attributes {stable_mosaic.version = 11 : i64} {
  func.func @gatv2_kernel(%arg0: i32, %arg1: memref<16x4xf32, #tpu.memory_space<vmem>>, %arg2: memref<8x16xf32, #tpu.memory_space<vmem>>, %arg3: memref<8x16x3xf32, #tpu.memory_space<vmem>>, %arg4: memref<4x32xf32, #tpu.memory_space<vmem>>, %arg5: memref<1x32xf32, #tpu.memory_space<vmem>>, %arg6: memref<4x32xf32, #tpu.memory_space<vmem>>, %arg7: memref<1x32xf32, #tpu.memory_space<vmem>>, %arg8: memref<3x32xf32, #tpu.memory_space<vmem>>, %arg9: memref<32x32xf32, #tpu.memory_space<vmem>>, %arg10: memref<1x32xf32, #tpu.memory_space<vmem>>, %arg11: memref<1x32xf32, #tpu.memory_space<vmem>>, %arg12: memref<1x32xf32, #tpu.memory_space<vmem>>, %arg13: memref<8x32xf32, #tpu.memory_space<vmem>>) attributes {dimension_semantics = [#tpu.dimension_semantics<parallel>], iteration_bounds = array<i64: 2>, scalar_prefetch = 0 : i64, scratch_operands = 0 : i64, tpu.core_type = #tpu.core_type<tc>, window_params = [{pipeline_mode = #tpu.pipeline_mode<synchronous>, transform_indices = @transform_0, window_bounds = array<i64: 16, 4>}, {transform_indices = @transform_1, window_bounds = array<i64: 8, 16>}, {transform_indices = @transform_2, window_bounds = array<i64: 8, 16, 3>}, {pipeline_mode = #tpu.pipeline_mode<synchronous>, transform_indices = @transform_3, window_bounds = array<i64: 4, 32>}, {pipeline_mode = #tpu.pipeline_mode<synchronous>, transform_indices = @transform_4, window_bounds = array<i64: 1, 32>}, {pipeline_mode = #tpu.pipeline_mode<synchronous>, transform_indices = @transform_5, window_bounds = array<i64: 4, 32>}, {pipeline_mode = #tpu.pipeline_mode<synchronous>, transform_indices = @transform_6, window_bounds = array<i64: 1, 32>}, {pipeline_mode = #tpu.pipeline_mode<synchronous>, transform_indices = @transform_7, window_bounds = array<i64: 3, 32>}, {pipeline_mode = #tpu.pipeline_mode<synchronous>, transform_indices = @transform_8, window_bounds = array<i64: 32, 32>}, {pipeline_mode = #tpu.pipeline_mode<synchronous>, transform_indices = @transform_9, window_bounds = array<i64: 1, 32>}, {pipeline_mode = #tpu.pipeline_mode<synchronous>, transform_indices = @transform_10, window_bounds = array<i64: 1, 32>}, {pipeline_mode = #tpu.pipeline_mode<synchronous>, transform_indices = @transform_11, window_bounds = array<i64: 1, 32>}, {transform_indices = @transform_12, window_bounds = array<i64: 8, 32>}]} {
    %c8_i32 = arith.constant 8 : i32
    %0 = arith.muli %arg0, %c8_i32 : i32
    %1 = tpu.assume_multiple %0, 8 : i32
    %c0 = arith.constant 0 : index
    %c0_0 = arith.constant 0 : index
    %2 = vector.load %arg1[%c0, %c0_0] : memref<16x4xf32, #tpu.memory_space<vmem>>, vector<16x4xf32>
    %3 = arith.truncf %2 : vector<16x4xf32> to vector<16x4xbf16>
    %c0_1 = arith.constant 0 : index
    %c0_2 = arith.constant 0 : index
    %4 = vector.load %arg4[%c0_1, %c0_2] : memref<4x32xf32, #tpu.memory_space<vmem>>, vector<4x32xf32>
    %5 = arith.truncf %4 : vector<4x32xf32> to vector<4x32xbf16>
    %cst = arith.constant dense<0.000000e+00> : vector<16x32xf32>
    %6 = tpu.matmul %3, %5, %cst {dimension_numbers = #tpu.dot_dimension_numbers<[1], [0], [0], [1], [0, 0, 1, 1], [], []>} : vector<16x4xbf16>, vector<4x32xbf16>, vector<16x32xf32> -> vector<16x32xf32>
    %c0_3 = arith.constant 0 : index
    %c0_4 = arith.constant 0 : index
    %7 = vector.load %arg5[%c0_3, %c0_4] : memref<1x32xf32, #tpu.memory_space<vmem>>, vector<1x32xf32>
    %8 = vector.broadcast %7 : vector<1x32xf32> to vector<16x32xf32>
    %9 = arith.addf %6, %8 : vector<16x32xf32>
    %10 = arith.index_cast %1 : i32 to index
    %c0_5 = arith.constant 0 : index
    %11 = vector.load %arg1[%10, %c0_5] : memref<16x4xf32, #tpu.memory_space<vmem>>, vector<8x4xf32>
    %12 = arith.truncf %11 : vector<8x4xf32> to vector<8x4xbf16>
    %c0_6 = arith.constant 0 : index
    %c0_7 = arith.constant 0 : index
    %13 = vector.load %arg6[%c0_6, %c0_7] : memref<4x32xf32, #tpu.memory_space<vmem>>, vector<4x32xf32>
    %14 = arith.truncf %13 : vector<4x32xf32> to vector<4x32xbf16>
    %cst_8 = arith.constant dense<0.000000e+00> : vector<8x32xf32>
    %15 = tpu.matmul %12, %14, %cst_8 {dimension_numbers = #tpu.dot_dimension_numbers<[1], [0], [0], [1], [0, 0, 1, 1], [], []>} : vector<8x4xbf16>, vector<4x32xbf16>, vector<8x32xf32> -> vector<8x32xf32>
    %c0_9 = arith.constant 0 : index
    %c0_10 = arith.constant 0 : index
    %16 = vector.load %arg7[%c0_9, %c0_10] : memref<1x32xf32, #tpu.memory_space<vmem>>, vector<1x32xf32>
    %17 = vector.broadcast %16 : vector<1x32xf32> to vector<8x32xf32>
    %18 = arith.addf %15, %17 : vector<8x32xf32>
    %c0_11 = arith.constant 0 : index
    %c0_12 = arith.constant 0 : index
    %c0_13 = arith.constant 0 : index
    %19 = vector.load %arg3[%c0_11, %c0_12, %c0_13] : memref<8x16x3xf32, #tpu.memory_space<vmem>>, vector<8x16x3xf32>
    %20 = vector.shape_cast %19 : vector<8x16x3xf32> to vector<128x3xf32>
    %21 = arith.truncf %20 : vector<128x3xf32> to vector<128x3xbf16>
    %c0_14 = arith.constant 0 : index
    %c0_15 = arith.constant 0 : index
    %22 = vector.load %arg8[%c0_14, %c0_15] : memref<3x32xf32, #tpu.memory_space<vmem>>, vector<3x32xf32>
    %23 = arith.truncf %22 : vector<3x32xf32> to vector<3x32xbf16>
    %cst_16 = arith.constant dense<0.000000e+00> : vector<128x32xf32>
    %24 = tpu.matmul %21, %23, %cst_16 {dimension_numbers = #tpu.dot_dimension_numbers<[1], [0], [0], [1], [0, 0, 1, 1], [], []>} : vector<128x3xbf16>, vector<3x32xbf16>, vector<128x32xf32> -> vector<128x32xf32>
    %25 = vector.shape_cast %24 : vector<128x32xf32> to vector<8x16x32xf32>
    %26 = vector.shape_cast %9 : vector<16x32xf32> to vector<1x16x32xf32>
    %27 = vector.shape_cast %18 : vector<8x32xf32> to vector<8x1x32xf32>
    %28 = vector.broadcast %26 : vector<1x16x32xf32> to vector<8x16x32xf32>
    %29 = vector.broadcast %27 : vector<8x1x32xf32> to vector<8x16x32xf32>
    %30 = arith.addf %28, %29 : vector<8x16x32xf32>
    %31 = arith.addf %30, %25 : vector<8x16x32xf32>
    %cst_17 = arith.constant 0.000000e+00 : f32
    %32 = vector.broadcast %cst_17 : f32 to vector<8x16x32xf32>
    %33 = arith.cmpf ogt, %31, %32 : vector<8x16x32xf32>
    %cst_18 = arith.constant 2.000000e-01 : f32
    %34 = vector.broadcast %cst_18 : f32 to vector<8x16x32xf32>
    %35 = arith.mulf %34, %31 : vector<8x16x32xf32>
    %36 = arith.select %33, %31, %35 : vector<8x16x32xi1>, vector<8x16x32xf32>
    %37 = vector.shape_cast %36 : vector<8x16x32xf32> to vector<128x32xf32>
    %38 = arith.truncf %37 : vector<128x32xf32> to vector<128x32xbf16>
    %c0_19 = arith.constant 0 : index
    %c0_20 = arith.constant 0 : index
    %39 = vector.load %arg9[%c0_19, %c0_20] : memref<32x32xf32, #tpu.memory_space<vmem>>, vector<32x32xf32>
    %40 = arith.truncf %39 : vector<32x32xf32> to vector<32x32xbf16>
    %cst_21 = arith.constant dense<0.000000e+00> : vector<128x32xf32>
    %41 = tpu.matmul %38, %40, %cst_21 {dimension_numbers = #tpu.dot_dimension_numbers<[1], [0], [0], [1], [0, 0, 1, 1], [], []>} : vector<128x32xbf16>, vector<32x32xbf16>, vector<128x32xf32> -> vector<128x32xf32>
    %42 = vector.shape_cast %41 : vector<128x32xf32> to vector<8x16x32xf32>
    %c0_22 = arith.constant 0 : index
    %c0_23 = arith.constant 0 : index
    %43 = vector.load %arg2[%c0_22, %c0_23] : memref<8x16xf32, #tpu.memory_space<vmem>>, vector<8x16xf32>
    %44 = vector.shape_cast %43 : vector<8x16xf32> to vector<8x16x1xf32>
    %cst_24 = arith.constant 0.000000e+00 : f32
    %45 = vector.broadcast %cst_24 : f32 to vector<8x16x1xf32>
    %46 = arith.cmpf ogt, %44, %45 : vector<8x16x1xf32>
    %cst_25 = arith.constant -1.000000e+30 : f32
    %47 = vector.shape_cast %46 : vector<8x16x1xi1> to vector<8x16x1xi1>
    %48 = vector.broadcast %47 : vector<8x16x1xi1> to vector<8x16x32xi1>
    %49 = vector.broadcast %cst_25 : f32 to vector<8x16x32xf32>
    %50 = arith.select %48, %42, %49 : vector<8x16x32xi1>, vector<8x16x32xf32>
    %cst_26 = arith.constant dense<0xFF800000> : vector<8x32xf32>
    %51 = vector.multi_reduction <maximumf>, %50, %cst_26 [1] : vector<8x16x32xf32> to vector<8x32xf32>
    %52 = vector.shape_cast %51 : vector<8x32xf32> to vector<8x1x32xf32>
    %cst_27 = arith.constant 0.000000e+00 : f32
    %53 = vector.broadcast %cst_27 : f32 to vector<8x16x1xf32>
    %54 = arith.cmpf ogt, %44, %53 : vector<8x16x1xf32>
    %55 = vector.broadcast %52 : vector<8x1x32xf32> to vector<8x16x32xf32>
    %56 = arith.subf %50, %55 : vector<8x16x32xf32>
    %57 = math.exp %56 : vector<8x16x32xf32>
    %cst_28 = arith.constant 0.000000e+00 : f32
    %58 = vector.shape_cast %54 : vector<8x16x1xi1> to vector<8x16x1xi1>
    %59 = vector.broadcast %58 : vector<8x16x1xi1> to vector<8x16x32xi1>
    %60 = vector.broadcast %cst_28 : f32 to vector<8x16x32xf32>
    %61 = arith.select %59, %57, %60 : vector<8x16x32xi1>, vector<8x16x32xf32>
    %cst_29 = arith.constant dense<0.000000e+00> : vector<8x32xf32>
    %62 = vector.multi_reduction <add>, %61, %cst_29 [1] : vector<8x16x32xf32> to vector<8x32xf32>
    %63 = vector.shape_cast %62 : vector<8x32xf32> to vector<8x1x32xf32>
    %cst_30 = arith.constant 9.99999968E-21 : f32
    %64 = vector.broadcast %cst_30 : f32 to vector<8x1x32xf32>
    %65 = arith.maximumf %63, %64 : vector<8x1x32xf32>
    %66 = tpu.reciprocal %65 {approx = true} : vector<8x1x32xf32> -> vector<8x1x32xf32>
    %67 = vector.broadcast %66 : vector<8x1x32xf32> to vector<8x16x32xf32>
    %68 = arith.mulf %61, %67 : vector<8x16x32xf32>
    %69 = vector.shape_cast %9 : vector<16x32xf32> to vector<1x16x32xf32>
    %70 = vector.broadcast %69 : vector<1x16x32xf32> to vector<8x16x32xf32>
    %71 = arith.mulf %68, %70 : vector<8x16x32xf32>
    %cst_31 = arith.constant dense<0.000000e+00> : vector<8x32xf32>
    %72 = vector.multi_reduction <add>, %71, %cst_31 [1] : vector<8x16x32xf32> to vector<8x32xf32>
    %c0_32 = arith.constant 0 : index
    %c0_33 = arith.constant 0 : index
    %73 = vector.load %arg10[%c0_32, %c0_33] : memref<1x32xf32, #tpu.memory_space<vmem>>, vector<1x32xf32>
    %74 = vector.broadcast %73 : vector<1x32xf32> to vector<8x32xf32>
    %75 = arith.addf %72, %74 : vector<8x32xf32>
    %cst_34 = arith.constant 0.000000e+00 : f32
    %76 = vector.broadcast %cst_34 : f32 to vector<8x32xf32>
    %77 = arith.maximumf %75, %76 : vector<8x32xf32>
    %cst_35 = arith.constant dense<0.000000e+00> : vector<8xf32>
    %78 = vector.multi_reduction <add>, %77, %cst_35 [1] : vector<8x32xf32> to vector<8xf32>
    %79 = vector.shape_cast %78 : vector<8xf32> to vector<8x1xf32>
    %cst_36 = arith.constant 3.200000e+01 : f32
    %80 = vector.broadcast %cst_36 : f32 to vector<8x1xf32>
    %81 = arith.divf %79, %80 : vector<8x1xf32>
    %82 = vector.broadcast %81 : vector<8x1xf32> to vector<8x32xf32>
    %83 = arith.subf %77, %82 : vector<8x32xf32>
    %84 = arith.mulf %83, %83 : vector<8x32xf32>
    %cst_37 = arith.constant dense<0.000000e+00> : vector<8xf32>
    %85 = vector.multi_reduction <add>, %84, %cst_37 [1] : vector<8x32xf32> to vector<8xf32>
    %86 = vector.shape_cast %85 : vector<8xf32> to vector<8x1xf32>
    %cst_38 = arith.constant 3.200000e+01 : f32
    %87 = vector.broadcast %cst_38 : f32 to vector<8x1xf32>
    %88 = arith.divf %86, %87 : vector<8x1xf32>
    %89 = vector.broadcast %81 : vector<8x1xf32> to vector<8x32xf32>
    %90 = arith.subf %77, %89 : vector<8x32xf32>
    %cst_39 = arith.constant 9.99999974E-6 : f32
    %91 = vector.broadcast %cst_39 : f32 to vector<8x1xf32>
    %92 = arith.addf %88, %91 : vector<8x1xf32>
    %93 = math.rsqrt %92 : vector<8x1xf32>
    %94 = vector.broadcast %93 : vector<8x1xf32> to vector<8x32xf32>
    %95 = arith.mulf %90, %94 : vector<8x32xf32>
    %c0_40 = arith.constant 0 : index
    %c0_41 = arith.constant 0 : index
    %96 = vector.load %arg11[%c0_40, %c0_41] : memref<1x32xf32, #tpu.memory_space<vmem>>, vector<1x32xf32>
    %97 = vector.broadcast %96 : vector<1x32xf32> to vector<8x32xf32>
    %98 = arith.mulf %95, %97 : vector<8x32xf32>
    %c0_42 = arith.constant 0 : index
    %c0_43 = arith.constant 0 : index
    %99 = vector.load %arg12[%c0_42, %c0_43] : memref<1x32xf32, #tpu.memory_space<vmem>>, vector<1x32xf32>
    %100 = vector.broadcast %99 : vector<1x32xf32> to vector<8x32xf32>
    %101 = arith.addf %98, %100 : vector<8x32xf32>
    %c0_44 = arith.constant 0 : index
    %c0_45 = arith.constant 0 : index
    %102 = vector.load %arg13[%c0_44, %c0_45] : memref<8x32xf32, #tpu.memory_space<vmem>>, vector<8x32xf32>
    tpu.vector_store %arg13[%c0_44, %c0_45], %101 {strides = array<i32>} : memref<8x32xf32, #tpu.memory_space<vmem>>, vector<8x32xf32>,
    return
  }
  func.func @transform_0(%arg0: i32) -> (i32, i32) {
    %c0_i32 = arith.constant 0 : i32
    %c0_i32_0 = arith.constant 0 : i32
    %c0_i32_1 = arith.constant 0 : i32
    return %c0_i32, %c0_i32_0 : i32, i32
  }
  func.func @transform_1(%arg0: i32) -> (i32, i32) {
    %c0_i32 = arith.constant 0 : i32
    %c0_i32_0 = arith.constant 0 : i32
    return %arg0, %c0_i32 : i32, i32
  }
  func.func @transform_2(%arg0: i32) -> (i32, i32, i32) {
    %c0_i32 = arith.constant 0 : i32
    %c0_i32_0 = arith.constant 0 : i32
    %c0_i32_1 = arith.constant 0 : i32
    return %arg0, %c0_i32, %c0_i32_0 : i32, i32, i32
  }
  func.func @transform_3(%arg0: i32) -> (i32, i32) {
    %c0_i32 = arith.constant 0 : i32
    %c0_i32_0 = arith.constant 0 : i32
    %c0_i32_1 = arith.constant 0 : i32
    return %c0_i32, %c0_i32_0 : i32, i32
  }
  func.func @transform_4(%arg0: i32) -> (i32, i32) {
    %c0_i32 = arith.constant 0 : i32
    %c0_i32_0 = arith.constant 0 : i32
    %c0_i32_1 = arith.constant 0 : i32
    return %c0_i32, %c0_i32_0 : i32, i32
  }
  func.func @transform_5(%arg0: i32) -> (i32, i32) {
    %c0_i32 = arith.constant 0 : i32
    %c0_i32_0 = arith.constant 0 : i32
    %c0_i32_1 = arith.constant 0 : i32
    return %c0_i32, %c0_i32_0 : i32, i32
  }
  func.func @transform_6(%arg0: i32) -> (i32, i32) {
    %c0_i32 = arith.constant 0 : i32
    %c0_i32_0 = arith.constant 0 : i32
    %c0_i32_1 = arith.constant 0 : i32
    return %c0_i32, %c0_i32_0 : i32, i32
  }
  func.func @transform_7(%arg0: i32) -> (i32, i32) {
    %c0_i32 = arith.constant 0 : i32
    %c0_i32_0 = arith.constant 0 : i32
    %c0_i32_1 = arith.constant 0 : i32
    return %c0_i32, %c0_i32_0 : i32, i32
  }
  func.func @transform_8(%arg0: i32) -> (i32, i32) {
    %c0_i32 = arith.constant 0 : i32
    %c0_i32_0 = arith.constant 0 : i32
    %c0_i32_1 = arith.constant 0 : i32
    return %c0_i32, %c0_i32_0 : i32, i32
  }
  func.func @transform_9(%arg0: i32) -> (i32, i32) {
    %c0_i32 = arith.constant 0 : i32
    %c0_i32_0 = arith.constant 0 : i32
    %c0_i32_1 = arith.constant 0 : i32
    return %c0_i32, %c0_i32_0 : i32, i32
  }
  func.func @transform_10(%arg0: i32) -> (i32, i32) {
    %c0_i32 = arith.constant 0 : i32
    %c0_i32_0 = arith.constant 0 : i32
    %c0_i32_1 = arith.constant 0 : i32
    return %c0_i32, %c0_i32_0 : i32, i32
  }
  func.func @transform_11(%arg0: i32) -> (i32, i32) {
    %c0_i32 = arith.constant 0 : i32
    %c0_i32_0 = arith.constant 0 : i32
    %c0_i32_1 = arith.constant 0 : i32
    return %c0_i32, %c0_i32_0 : i32, i32
  }
  func.func @transform_12(%arg0: i32) -> (i32, i32) {
    %c0_i32 = arith.constant 0 : i32
    %c0_i32_0 = arith.constant 0 : i32
    return %arg0, %c0_i32 : i32, i32
  }
}

</mosaic_0001>

<bundles_post_ra>
// kernel: tpu_custom_call.1
= control target key start
LH: loop header
LB: loop body
LE: loop exit
PB: predicated region body
PF: predicated region fallthrough
CT: control target
= control target key end

     0   :  { %s2664_s0 = inlined_call_operand.vmem [shape: f32[16,4], index: 0, kind: input, shape index: {}]   ;;  %s2665_s1 = inlined_call_operand.vmem [shape: f32[16,16], index: 1, kind: input, shape index: {}]   ;;  %s2666_s2 = inlined_call_operand.vmem [shape: f32[16,16,3], index: 2, kind: input, shape index: {}]   ;;  %s2667_s3 = inlined_call_operand.vmem [shape: f32[4,32], index: 3, kind: input, shape index: {}]   ;;  %s2668_s4 = inlined_call_operand.vmem [shape: f32[1,32], index: 4, kind: input, shape index: {}]   ;;  %s2669_s5 = inlined_call_operand.vmem [shape: f32[4,32], index: 5, kind: input, shape index: {}]   ;;  %s2670_s6 = inlined_call_operand.vmem [shape: f32[1,32], index: 6, kind: input, shape index: {}]   ;;  %s2671_s7 = inlined_call_operand.vmem [shape: f32[3,32], index: 7, kind: input, shape index: {}]   ;;  %s2672_s8 = inlined_call_operand.vmem [shape: f32[32,32], index: 8, kind: input, shape index: {}]   ;;  %s2673_s9 = inlined_call_operand.vmem [shape: f32[1,32], index: 9, kind: input, shape index: {}]   ;;  %s2674_s10 = inlined_call_operand.vmem [shape: f32[1,32], index: 10, kind: input, shape index: {}]   ;;  %s2675_s11 = inlined_call_operand.vmem [shape: f32[1,32], index: 11, kind: input, shape index: {}]   ;;  %s2676_s12 = inlined_call_operand.hbm [shape: f32[16,32], index: 12, kind: output, shape index: {}]  }
   0x1   :  { %2678 = sst [smem:[#allocation5_spill]] %s2664_s0 }
   0x2   :  { %2679 = sst [smem:[#allocation6_spill]] %s2667_s3 }
   0x3   :  { %17 = vsyncpa [#allocation3], 0 }
   0x4   :  { %19 = vsyncpa [#allocation3 + $0x1], 0  ;;  %s2116_s21 = smov 0   ;;  %s2118_s22 = smov 0  }
   0x5   :  { %s2120_s23 = smov 0   ;;  %s2122_s24 = smov 0  }
   0x6 LB: > { %s2137_s25 = sadd.s32 4294967295, %s2044_s24   ;;  %s1780_s26 = sadd.s32 4294967294, %s2044_s24   ;;  %s2044_s24 = sphi %s2122_s24, %s2688_s24   ;;  %s2040_s23 = sphi %s2120_s23, %s2687_s23   ;;  %s2036_s22 = sphi %s2118_s22, %s2686_s22   ;;  %s2032_s21 = sphi %s2116_s21, %s2685_s21  }
   0x7   : > { %s2141_s27 = sadd.s32 1, %s2044_s24   ;;  %s294_s28 = sadd.s32 1, %s2040_s23 }
   0x8   : > { %s291_s29 = ssub.s32 %s2044_s24, %s2141_s27  ;;  %p304_p0 = scmp.ne.s32.totalorder %s2040_s23, %s2036_s22 }
   0x9   : > { %p292_p1 = scmp.eq.s32.totalorder %s291_s29, 0  ;;  %p305_p2 = scmp.eq.s32.totalorder %s2137_s25, 1 }
   0xa   : > { %p310_p3 = scmp.ne.s32.totalorder %s2036_s22, %s2032_s21  ;;  %p311_p4 = scmp.eq.s32.totalorder %s1780_s26, 1 }
   0xb   : > { %s2152_s30 = scalar_select %p292_p1, %s2040_s23, %s294_s28  }
   0xc   : > { %p2154_p5 = por %p305_p2, %p304_p0  ;;  %p2158_p6 = por %p311_p4, %p310_p3 }
   0xd   : > { %p1783_p7 = scmp.ge.s32.totalorder %s2044_s24, 1  ;;  %p376_p8 = scmp.lt.s32.totalorder %s2044_s24, 3 }
   0xf   : > { %p377_p9 = pnand %p1783_p7, %p376_p8 }
  0x10   : > { %s2682_s3 = sld [smem:[#allocation6_spill]] (!%p377_p9)  ;;  %s1786_s29 = sshll.u32 (!%p377_p9), %s2137_s25, 3 }
  0x11   : > { %380 = sbr.rel (%p377_p9) target bundleno = 915 (0x393), region = 68  ;;  %s2683_s0 = sld [smem:[#allocation5_spill]] (!%p377_p9) }
  0x12   : > { %p428_p10 = scmp.lt.s32.totalorder (!%p377_p9), %s1786_s29, 15  ;;  %p423_p11 = scmp.lt.s32.totalorder (!%p377_p9), %s2137_s25, 1 }
  0x13   : > { %s1814_s18 = sshll.u32 (!%p377_p9), %s2137_s25, 7  ;;  %s2050_s16 = smov (!%p377_p9), [#allocation2]  }
  0x14   : > { %s2625_s28 = scalar_lea.hbm (!%p377_p9), %s2676_s12, %s1814_s18 }
  0x16   : > { %v439_v0 = vld [vmem:[%s2682_s3] sm:$0xf]  ;;  %vm452_vm0 = vcmask 1041408   ;;  %v2046_v2 = vmov 0.0   ;;  %vm2047_vm1 = vmmov 0   ;;  %vm606_vm2 = vcmask 1040384  }
  0x17   : > { %v500_v1 = vld [vmem:[%s2669_s5] sm:$0xf]  ;;  %1841 = vmatprep.subr.bf16.mxu0 %v2046_v2  ;;  %1847 = vmatprep.subr.bf16.mxu1 %v2046_v2  ;;  %v440_v3 = vpack.c.bf16 %v439_v0, %v439_v0  ;;  %v437_v6 = vld [vmem:[%s2683_s0 + $0x8] sm:$0xff]  ;;  %s497_s17 = scalar_lea.vmem %s2683_s0, %s1786_s29  ;;  %v2048_v13 = vmov 65535   ;;  %vm448_vm3 = vcmask 31744   ;;  %s2690_s29 = smov (!%p428_p10, %s1786_s29), 15  ;;  %v714_v48 = vlaneseq }
  0x18   : > { %v501_v4 = vpack.c.bf16 %v500_v1, %v500_v1  ;;  %v436_v5 = vld [vmem:[%s2683_s0] sm:$0xff]  ;;  %1843 = vmatprep.mubr.msk.bf16.mxu0 %vm2047_vm1, %v2046_v2  ;;  %1849 = vmatprep.mubr.msk.bf16.mxu1 %vm2047_vm1, %v2046_v2  ;;  %v607_v14 = vsel %vm606_vm2, 4294967295, %v2048_v13  ;;  %s1817_s19 = sshll.u32 %s2690_s29, 4  ;;  %vm581_vm4 = vcmask 23552   ;;  %v889_v42 = vld [vmem:[%s2672_s8 + $0x10] sm:$0xff]  ;;  %v890_v43 = vld [vmem:[%s2672_s8 + $0x18] sm:$0xff] }
  0x19   : > { %v438_v7 = vpack.c.bf16 %v437_v6, %v436_v5  ;;  %v579_v8 = vld [vmem:[%s2671_s7] sm:$0x7]  ;;  %v454_v9 = vsel %vm452_vm0, %v440_v3, 0  ;;  %v608_v16 = vsel %vm452_vm0, %v607_v14, 0  ;;  %s2189_s26 = scalar_lea.vmem %s2666_s2, %s1817_s19  ;;  %v892_v44 = vpack.c.bf16 %v890_v43, %v889_v42  ;;  %v888_v46 = vld [vmem:[%s2672_s8 + $0x8] sm:$0xff]  ;;  %s420_s29 = sand.u32 1, %s2036_s22  }
  0x1a   : > { %v513_v10 = vsel %vm452_vm0, %v501_v4, 0  ;;  %v498_v11 = vld [vmem:[%s497_s17] sm:$0xff]  ;;  %v580_v12 = vpack.c.bf16 %v579_v8, %v579_v8  ;;  %1842 = vmatpush3.bf16.msra.mxu0 %v454_v9  ;;  %v556_v19 = vld [vmem:[%s2189_s26 + $0x8] sm:$0xff]  ;;  %v557_v20 = vld [vmem:[%s2189_s26 + $0x10] sm:$0xff]  ;;  %v715_v49 = vshrl.u32 %v714_v48, 7  ;;  %s424_s20 = scalar_select %p423_p11, %s2137_s25, 1 }
  0x1b   : > { %1848 = vmatpush3.bf16.msra.mxu1 %v513_v10  ;;  %v499_v15 = vpack.c.bf16 %v498_v11, %v498_v11  ;;  %v555_v18 = vld [vmem:[%s2189_s26] sm:$0xff]  ;;  %v558_v22 = vld [vmem:[%s2189_s26 + $0x18] sm:$0xff]  ;;  %v560_v24 = vld [vmem:[%s2189_s26 + $0x28] sm:$0xff]  ;;  %v2049_v3 = vmov 1966171168   ;;  %vm893_vm9 = vcmask 261120  }
  0x1c   : > { %v610_v17 = vand.u32 %v608_v16, %v580_v12  ;;  %v571_v21 = vpack.c.bf16 %v556_v19, %v555_v18  ;;  %v559_v23 = vld [vmem:[%s2189_s26 + $0x20] sm:$0xff]  ;;  %v572_v25 = vpack.c.bf16 %v558_v22, %v557_v20  ;;  %v561_v27 = vld [vmem:[%s2189_s26 + $0x30] sm:$0xff]  ;;  %v562_v28 = vld [vmem:[%s2189_s26 + $0x38] sm:$0xff]  ;;  %1871 = vmatprep.subr.bf16.mxu1 %v892_v44  ;;  %v1029_v50 = vsub.s32 1, %v715_v49  ;;  %s2612_s17 = sshll.u32 %s420_s29, 3  ;;  %s1694_s25 = scalar_lea.sflag [#allocation3], %s420_s29 }
  0x1d   : > { %1844 = vmatmul.mubr.msk.bf16.vlgmr.msra.gmra.mxu0 %vm448_vm3, %v438_v7  ;;  %v573_v26 = vpack.c.bf16 %v560_v24, %v559_v23  ;;  %v563_v29 = vld [vmem:[%s2189_s26 + $0x40] sm:$0xff]  ;;  %v564_v30 = vld [vmem:[%s2189_s26 + $0x48] sm:$0xff]  ;;  %v574_v31 = vpack.c.bf16 %v562_v28, %v561_v27  ;;  %v565_v33 = vld [vmem:[%s2189_s26 + $0x50] sm:$0xff]  ;;  %v1040_v51 = vsub.s32 2, %v715_v49  ;;  %v2232_v55 = vsub.s32 0, %v715_v49  ;;  %s422_s19 = scalar_lea.vmem [#allocation2], %s2612_s17 }
  0x1e   : > { %1850 = vmatmul.mubr.msk.bf16.vlgmr.msra.gmra.mxu1 %vm448_vm3, %v499_v15  ;;  %1853 = vmatprep.subr.bf16.mxu0 %v610_v17  ;;  %v575_v32 = vpack.c.bf16 %v564_v30, %v563_v29  ;;  %v566_v34 = vld [vmem:[%s2189_s26 + $0x58] sm:$0xff]  ;;  %v567_v35 = vld [vmem:[%s2189_s26 + $0x60] sm:$0xff]  ;;  %v568_v36 = vld [vmem:[%s2189_s26 + $0x68] sm:$0xff]  ;;  %v1051_v57 = vsub.s32 3, %v715_v49  ;;  %v1062_v59 = vsub.s32 4, %v715_v49  ;;  %v1073_v61 = vsub.s32 5, %v715_v49 }
  0x1f   : > { %1854 = vmatpush3.bf16.msra.mxu0 %v610_v17  ;;  %1855 = vmatprep.mubr.msk.bf16.mxu0 %vm581_vm4, %v571_v21  ;;  %v576_v37 = vpack.c.bf16 %v566_v34, %v565_v33  ;;  %v577_v38 = vpack.c.bf16 %v568_v36, %v567_v35  ;;  %v569_v39 = vld [vmem:[%s2189_s26 + $0x70] sm:$0xff]  ;;  %v570_v40 = vld [vmem:[%s2189_s26 + $0x78] sm:$0xff]  ;;  %v887_v45 = vld [vmem:[%s2672_s8] sm:$0xff]  ;;  %s1785_s26 = sshll.u32 %s424_s20, 3  ;;  %v1084_v63 = vsub.s32 6, %v715_v49  ;;  %v1095_v1 = vsub.s32 7, %v715_v49 }
  0x20   : > { %v578_v41 = vpack.c.bf16 %v570_v40, %v569_v39  ;;  %1872 = vmatpush3.bf16.msra.mxu1 %v892_v44  ;;  %v891_v47 = vpack.c.bf16 %v888_v46, %v887_v45  ;;  %s426_s15 = scalar_lea.vmem %s2665_s1, %s1785_s26  ;;  %v712_v4 = vunpack.c.l.s4 %v2049_v3  ;;  %v1792_v6 = vld [vmem:[%s2670_s6] ss:$0 sm:$0xff]  ;;  %s1707_s3 = sshll.u32 %s422_s19, 4  ;;  %s1708_s3 = int_to_ptr.vmem [resolvable:$true] %s1707_s3 }
  0x21   : > { %v1015_v52 = vld [vmem:[%s426_s15] sm:$0xff]  ;;  %s1984_s15 = scalar_lea.vmem %s1708_s3, 128  ;;  %s1988_s17 = sshll.u32 %s2050_s16, 4  ;;  %s1989_s17 = int_to_ptr.vmem [resolvable:$false] %s1988_s17 }
  0x22   : > { %1873 = vmatprep.subr.bf16.mxu1 %v891_v47  ;;  %v1030_v53 = vrot.slane %v1015_v52, %v1029_v50  ;;  %v1041_v54 = vrot.slane %v1015_v52, %v1040_v51  ;;  %v1019_v56 = vrot.slane %v1015_v52, %v2232_v55  ;;  %v1052_v58 = vrot.slane %v1015_v52, %v1051_v57  ;;  %v1790_v14 = vld [vmem:[%s2668_s4] ss:$0 sm:$0xff]  ;;  %p1985_p12 = scmp.ne.s32.totalorder %s1708_s3, %s1984_s15  ;;  %s1990_s0 = scalar_lea.vmem %s1989_s17, 256 }
  0x23   : > { %v1063_v60 = vrot.slane %v1015_v52, %v1062_v59  ;;  %v1074_v62 = vrot.slane %v1015_v52, %v1073_v61  ;;  %v1085_v0 = vrot.slane %v1015_v52, %v1084_v63  ;;  %v1096_v2 = vrot.slane %v1015_v52, %v1095_v1  ;;  %p1991_p1 = scmp.lt.s32.totalorder %s1708_s3, %s1989_s17  ;;  %p1992_p2 = scmp.lt.s32.totalorder %s1990_s0, %s1984_s15 }
  0x24   : > { %1874 = vmatpush3.bf16.msra.mxu1 %v891_v47  ;;  %1032 = vbcast.lane.b32.xlu0 %v1030_v53, 256  ;;  %v713_v5 = vunpack.c.0.s8 %v712_v4  ;;  %p1986_p13 = pnand %p1985_p12, %p2154_p5 }
  0x25   : > { %1856 = vmatmul.mubr.msk.bf16.vlgmr.msra.gmra.mxu0 %vm581_vm4, %v572_v25  ;;  %1043 = vbcast.lane.b32.xlu1 %v1041_v54, 256  ;;  %p1993_p3 = por %p1992_p2, %p1991_p1 }
  0x26   : > { %1859 = vmatprep.mubr.msk.bf16.mxu0 %vm581_vm4, %v573_v26  ;;  %v716_v7 = vsub.s32 %v713_v5, %v715_v49  ;;  %p1987_p0 = pneg %p1986_p13 }
  0x28   : > { %1036 = vbcast.lane.b32.xlu0 %v1030_v53, 264  ;;  %p1994_p4 = pnand %p1993_p3, %p1987_p0 }
  0x29   : > { %1047 = vbcast.lane.b32.xlu1 %v1041_v54, 264 }
  0x2c   : > { %1021 = vbcast.lane.b32.xlu0 %v1019_v56, 256 }
  0x2d   : > { %1860 = vmatmul.mubr.msk.bf16.gmra.mxu0 %vm581_vm4, %v574_v31  ;;  %1025 = vbcast.lane.b32.xlu1 %v1019_v56, 264 }
  0x2e   : > { %1863 = vmatprep.mubr.msk.bf16.mxu0 %vm581_vm4, %v575_v32 }
  0x30   : > { %1054 = vbcast.lane.b32.xlu0 %v1052_v58, 256 }
  0x31   : > { %1058 = vbcast.lane.b32.xlu1 %v1052_v58, 264 }
  0x34   : > { %1065 = vbcast.lane.b32.xlu0 %v1063_v60, 256 }
  0x35   : > { %1864 = vmatmul.mubr.msk.bf16.gmra.mxu0 %vm581_vm4, %v576_v37  ;;  %1069 = vbcast.lane.b32.xlu1 %v1063_v60, 264 }
  0x36   : > { %1867 = vmatprep.mubr.msk.bf16.mxu0 %vm581_vm4, %v577_v38 }
  0x38   : > { %1076 = vbcast.lane.b32.xlu0 %v1074_v62, 256 }
  0x39   : > { %1080 = vbcast.lane.b32.xlu1 %v1074_v62, 264 }
  0x3c   : > { %1087 = vbcast.lane.b32.xlu0 %v1085_v0, 256 }
  0x3d   : > { %1868 = vmatmul.mubr.msk.bf16.gmra.mxu0 %vm581_vm4, %v578_v41  ;;  %1091 = vbcast.lane.b32.xlu1 %v1085_v0, 264 }
  0x40   : > { %1098 = vbcast.lane.b32.xlu0 %v1096_v2, 256 }
  0x41   : > { %1102 = vbcast.lane.b32.xlu1 %v1096_v2, 264 }
  0xdd   : > { %v490_v8 = vpop.f32.mrf.mxu0 }
  0xde   : > { %v549_v9 = vpop.f32.mrf.mxu1  ;;  %v2241_v22 = vadd.f32 %v1790_v14, %v490_v8 }
  0xdf   : > { %v550_v10 = vadd.f32 %v1792_v6, %v549_v9  ;;  %v1845_v11 = vpop.f32.mrf.mxu0 }
  0xe0   : > { %v1851_v12 = vpop.f32.mrf.mxu1 }
  0xe1   : > { %v717_v13 = vrot.slane %v550_v10, %v716_v7  ;;  %v493_v15 = vpop.f32.mrf.mxu0  ;;  %v710_v19 = vcombine.high %v550_v10, %v550_v10 }
  0xe2   : > { %v552_v16 = vpop.f32.mrf.mxu1  ;;  %v2244_v26 = vadd.f32 %v1790_v14, %v493_v15 }
  0xe3   : > { %v725_v17 = vcombine.high %v717_v13, %v717_v13  ;;  %v733_v18 = vrot.slane %v717_v13, %v716_v7  ;;  %v1846_v20 = vpop.f32.mrf.mxu0  ;;  %v724_v30 = vrot.slane %v710_v19, %v716_v7 }
  0xe4   : > { %v1852_v21 = vpop.f32.mrf.mxu1 }
  0xe5   : > { %v747_v23 = vrot.slane %v725_v17, %v716_v7  ;;  %v762_v24 = vrot.slane %v733_v18, %v2232_v55  ;;  %v1857_v25 = vpop.f32.mrf.mxu0  ;;  %v755_v29 = vcombine.high %v733_v18, %v733_v18  ;;  %v726_v40 = vcombine.high %v724_v30, %v724_v30 }
  0xe6   : > { %v740_v53 = vrot.slane %v724_v30, %v716_v7 }
  0xe7   : > { %v766_v27 = vrot.slane %v747_v23, %v2232_v55  ;;  %v799_v28 = vadd.f32 %v762_v24, %v2241_v22  ;;  %v646_v31 = vpop.f32.mrf.mxu0  ;;  %v757_v35 = vcombine.high %v747_v23, %v747_v23  ;;  %v770_v39 = vrot.slane %v755_v29, %v2232_v55 }
  0xe8   : > { %v800_v42 = vadd.f32 %v762_v24, %v2244_v26  ;;  %v754_v52 = vrot.slane %v726_v40, %v716_v7  ;;  %v778_v6 = vrot.slane %v740_v53, %v2232_v55  ;;  %v756_v13 = vcombine.high %v740_v53, %v740_v53 }
  0xe9   : > { %v801_v32 = vadd.f32 %v766_v27, %v2241_v22  ;;  %v815_v33 = vadd.f32 %v799_v28, %v646_v31  ;;  %v802_v34 = vadd.f32 %v766_v27, %v2244_v26  ;;  %v1858_v36 = vpop.f32.mrf.mxu0  ;;  %v774_v45 = vrot.slane %v757_v35, %v2232_v55 }
  0xea   : > { %v803_v49 = vadd.f32 %v770_v39, %v2241_v22  ;;  %v804_v1 = vadd.f32 %v770_v39, %v2244_v26  ;;  %v782_v5 = vrot.slane %v754_v52, %v2232_v55  ;;  %v807_v16 = vadd.f32 %v778_v6, %v2241_v22 }
  0xeb   : > { %v817_v37 = vadd.f32 %v1857_v25, %v801_v32  ;;  %v818_v38 = vadd.f32 %v1858_v36, %v802_v34  ;;  %v649_v41 = vpop.f32.mrf.mxu0  ;;  %v847_v44 = vmul.f32 0.2, %v815_v33  ;;  %vm831_vm7 = vcmp.gt.f32.partialorder %v815_v33, 0.0 }
  0xec   : > { %v816_v47 = vadd.f32 %v800_v42, %v649_v41  ;;  %v805_v57 = vadd.f32 %v774_v45, %v2241_v22  ;;  %v806_v62 = vadd.f32 %v774_v45, %v2244_v26  ;;  %v809_v14 = vadd.f32 %v782_v5, %v2241_v22 }
  0xed   : > { %v849_v43 = vmul.f32 0.2, %v817_v37  ;;  %vm833_vm5 = vcmp.gt.f32.partialorder %v817_v37, 0.0  ;;  %vm834_vm6 = vcmp.gt.f32.partialorder %v818_v38, 0.0  ;;  %v850_v46 = vmul.f32 0.2, %v818_v38  ;;  %v1861_v48 = vpop.f32.mrf.mxu0 }
  0xee   : > { %vm832_vm8 = vcmp.gt.f32.partialorder %v816_v47, 0.0  ;;  %v848_v50 = vmul.f32 0.2, %v816_v47  ;;  %v863_v59 = vsel %vm831_vm7, %v815_v33, %v847_v44  ;;  %v821_v0 = vadd.f32 %v1861_v48, %v805_v57 }
  0xef   : > { %v662_v51 = vpop.f32.mrf.mxu0  ;;  %v865_v54 = vsel %vm833_vm5, %v817_v37, %v849_v43  ;;  %v866_v56 = vsel %vm834_vm6, %v818_v38, %v850_v46  ;;  %v758_v17 = vcombine.high %v754_v52, %v754_v52  ;;  %v810_v21 = vadd.f32 %v782_v5, %v2244_v26  ;;  %v2279_v5 = vpop.permute.xlu1 %1043 }
  0xf0   : > { %v819_v58 = vadd.f32 %v803_v49, %v662_v51  ;;  %v864_v60 = vsel %vm832_vm8, %v816_v47, %v848_v50  ;;  %v880_v2 = vpack.c.bf16 %v866_v56, %v865_v54  ;;  %v853_v11 = vmul.f32 0.2, %v821_v0 }
  0xf1   : > { %v1862_v61 = vpop.f32.mrf.mxu0  ;;  %v879_v63 = vpack.c.bf16 %v864_v60, %v863_v59  ;;  %vm837_vm13 = vcmp.gt.f32.partialorder %v821_v0, 0.0  ;;  %v808_v27 = vadd.f32 %v778_v6, %v2244_v26  ;;  %v786_v31 = vrot.slane %v756_v13, %v2232_v55 }
  0xf2   : > { %v822_v3 = vadd.f32 %v1862_v61, %v806_v62  ;;  %v851_v7 = vmul.f32 0.2, %v819_v58  ;;  %vm835_vm10 = vcmp.gt.f32.partialorder %v819_v58, 0.0  ;;  %v869_v28 = vsel %vm837_vm13, %v821_v0, %v853_v11 }
  0xf3   : > { %v665_v4 = vpop.f32.mrf.mxu0  ;;  %1875 = vmatprep.mubr.msk.bf16.mxu1 %vm893_vm9, %v879_v63  ;;  %v790_v34 = vrot.slane %v758_v17, %v2232_v55  ;;  %v811_v41 = vadd.f32 %v786_v31, %v2241_v22  ;;  %v812_v53 = vadd.f32 %v786_v31, %v2244_v26  ;;  %vm1108_vm13 = vcmp.gt.f32.partialorder %v2279_v5, 0.0 }
  0xf4   : > { %v820_v8 = vadd.f32 %v804_v1, %v665_v4  ;;  %vm838_vm11 = vcmp.gt.f32.partialorder %v822_v3, 0.0  ;;  %v854_v9 = vmul.f32 0.2, %v822_v3  ;;  %1876 = vmatmul.mubr.msk.bf16.vlgmr.msra.gmra.mxu1 %vm893_vm9, %v880_v2  ;;  %v867_v18 = vsel %vm835_vm10, %v819_v58, %v851_v7  ;;  %v2277_v4 = vpop.permute.xlu0 %1032  ;;  %v2283_v7 = vpop.permute.xlu1 %1047 }
  0xf5   : > { %v1865_v10 = vpop.f32.mrf.mxu0  ;;  %v813_v42 = vadd.f32 %v790_v34, %v2241_v22  ;;  %v814_v44 = vadd.f32 %v790_v34, %v2244_v26  ;;  %vm1106_vm6 = vcmp.gt.f32.partialorder %v2277_v4, 0.0 }
  0xf6   : > { %vm836_vm12 = vcmp.gt.f32.partialorder %v820_v8, 0.0  ;;  %v852_v12 = vmul.f32 0.2, %v820_v8  ;;  %v870_v19 = vsel %vm838_vm11, %v822_v3, %v854_v9  ;;  %v825_v29 = vadd.f32 %v1865_v10, %v809_v14 }
  0xf7   : > { %v678_v15 = vpop.f32.mrf.mxu0  ;;  %v882_v32 = vpack.c.bf16 %v870_v19, %v869_v28 }
  0xf8   : > { %v868_v20 = vsel %vm836_vm12, %v820_v8, %v852_v12  ;;  %v823_v24 = vadd.f32 %v807_v16, %v678_v15  ;;  %v857_v39 = vmul.f32 0.2, %v825_v29  ;;  %vm841_vm1 = vcmp.gt.f32.partialorder %v825_v29, 0.0  ;;  %v2281_v6 = vpop.permute.xlu0 %1036  ;;  %v2287_v9 = vpop.permute.xlu1 %1025 }
  0xf9   : > { %v881_v23 = vpack.c.bf16 %v868_v20, %v867_v18  ;;  %v1866_v25 = vpop.f32.mrf.mxu0  ;;  %vm1107_vm7 = vcmp.gt.f32.partialorder %v2281_v6, 0.0  ;;  %vm1105_vm10 = vcmp.gt.f32.partialorder %v2287_v9, 0.0 }
  0xfa   : > { %v826_v30 = vadd.f32 %v1866_v25, %v810_v21  ;;  %v855_v35 = vmul.f32 0.2, %v823_v24  ;;  %vm839_vm14 = vcmp.gt.f32.partialorder %v823_v24, 0.0  ;;  %v873_v50 = vsel %vm841_vm1, %v825_v29, %v857_v39 }
  0xfb   : > { %v681_v33 = vpop.f32.mrf.mxu0  ;;  %1879 = vmatprep.mubr.msk.bf16.mxu1 %vm893_vm9, %v881_v23 }
  0xfc   : > { %v858_v36 = vmul.f32 0.2, %v826_v30  ;;  %v824_v37 = vadd.f32 %v808_v27, %v681_v33  ;;  %vm842_vm15 = vcmp.gt.f32.partialorder %v826_v30, 0.0  ;;  %1880 = vmatmul.mubr.msk.bf16.gmra.mxu1 %vm893_vm9, %v882_v32  ;;  %v871_v55 = vsel %vm839_vm14, %v823_v24, %v855_v35  ;;  %v2285_v8 = vpop.permute.xlu0 %1021  ;;  %v2291_v11 = vpop.permute.xlu1 %1058 }
  0xfd   : > { %v1869_v38 = vpop.f32.mrf.mxu0  ;;  %vm1104_vm8 = vcmp.gt.f32.partialorder %v2285_v8, 0.0  ;;  %vm1111_vm12 = vcmp.gt.f32.partialorder %v2291_v11, 0.0  ;;  %vm1109_vm14 = vcmp.gt.f32.partialorder %v2283_v7, 0.0 }
  0xfe   : > { %vm840_vm0 = vcmp.gt.f32.partialorder %v824_v37, 0.0  ;;  %v856_v40 = vmul.f32 0.2, %v824_v37  ;;  %v874_v45 = vsel %vm842_vm15, %v826_v30, %v858_v36  ;;  %v829_v51 = vadd.f32 %v1869_v38, %v813_v42 }
  0xff   : > { %v694_v43 = vpop.f32.mrf.mxu0  ;;  %v884_v54 = vpack.c.bf16 %v874_v45, %v873_v50 }
 0x100   : > { %v872_v46 = vsel %vm840_vm0, %v824_v37, %v856_v40  ;;  %v827_v47 = vadd.f32 %v811_v41, %v694_v43  ;;  %v861_v60 = vmul.f32 0.2, %v829_v51  ;;  %vm845_vm5 = vcmp.gt.f32.partialorder %v829_v51, 0.0  ;;  %v2289_v10 = vpop.permute.xlu0 %1054  ;;  %v2295_v13 = vpop.permute.xlu1 %1069 }
 0x101   : > { %v883_v48 = vpack.c.bf16 %v872_v46, %v871_v55  ;;  %v1870_v49 = vpop.f32.mrf.mxu0  ;;  %vm1110_vm11 = vcmp.gt.f32.partialorder %v2289_v10, 0.0  ;;  %vm1113_vm1 = vcmp.gt.f32.partialorder %v2295_v13, 0.0 }
 0x102   : > { %v830_v52 = vadd.f32 %v1870_v49, %v814_v44  ;;  %v859_v57 = vmul.f32 0.2, %v827_v47  ;;  %vm843_vm2 = vcmp.gt.f32.partialorder %v827_v47, 0.0  ;;  %v877_v2 = vsel %vm845_vm5, %v829_v51, %v861_v60 }
 0x103   : > { %v697_v56 = vpop.f32.mrf.mxu0  ;;  %1883 = vmatprep.mubr.msk.bf16.mxu1 %vm893_vm9, %v883_v48 }
 0x104   : > { %v862_v58 = vmul.f32 0.2, %v830_v52  ;;  %v828_v59 = vadd.f32 %v812_v53, %v697_v56  ;;  %vm846_vm3 = vcmp.gt.f32.partialorder %v830_v52, 0.0  ;;  %1884 = vmatmul.mubr.msk.bf16.gmra.mxu1 %vm893_vm9, %v884_v54  ;;  %v875_v62 = vsel %vm843_vm2, %v827_v47, %v859_v57  ;;  %v2293_v12 = vpop.permute.xlu0 %1065  ;;  %v2315_v21 = vpop.permute.xlu1 %1080 }
 0x105   : > { %vm2677_vm0 = vcmp.gt.f32.partialorder %v2293_v12, 0.0  ;;  %vm1115_vm2 = vcmp.gt.f32.partialorder %v2315_v21, 0.0 }
 0x106   : > { %vm844_vm4 = vcmp.gt.f32.partialorder %v828_v59, 0.0  ;;  %v860_v61 = vmul.f32 0.2, %v828_v59  ;;  %v878_v63 = vsel %vm846_vm3, %v830_v52, %v862_v58 }
 0x107   : > { %v886_v3 = vpack.c.bf16 %v878_v63, %v877_v2 }
 0x108   : > { %v876_v0 = vsel %vm844_vm4, %v828_v59, %v860_v61  ;;  %v2313_v20 = vpop.permute.xlu0 %1076  ;;  %v2337_v39 = vpop.permute.xlu1 %1091 }
 0x109   : > { %v885_v1 = vpack.c.bf16 %v876_v0, %v875_v62  ;;  %vm1114_vm15 = vcmp.gt.f32.partialorder %v2313_v20, 0.0 }
 0x10b   : > { %1887 = vmatprep.mubr.msk.bf16.mxu1 %vm893_vm9, %v885_v1 }
 0x10c   : > { %1888 = vmatmul.mubr.msk.bf16.gmra.mxu1 %vm893_vm9, %v886_v3  ;;  %v2335_v38 = vpop.permute.xlu0 %1087  ;;  %v2365_v60 = vpop.permute.xlu1 %1102 }
 0x10d   : > { %vm1116_vm3 = vcmp.gt.f32.partialorder %v2335_v38, 0.0  ;;  %vm1119_vm5 = vcmp.gt.f32.partialorder %v2365_v60, 0.0 }
 0x110   : > { %v2363_v59 = vpop.permute.xlu0 %1098 }
 0x111   : > { %vm1118_vm4 = vcmp.gt.f32.partialorder %v2363_v59, 0.0 }
 0x1b4   : > { %v1877_v14 = vpop.f32.mrf.mxu1 }
 0x1b5   : > { %v2302_v16 = vsel %vm1106_vm6, %v1877_v14, -1e+30 }
 0x1b6   : > { %v952_v15 = vpop.f32.mrf.mxu1  ;;  %v1177_v23 = vsel %vm893_vm9, %v2302_v16, -inf }
 0x1b7   : > { %v2307_v18 = vsel %vm1104_vm8, %v952_v15, -1e+30 }
 0x1b8   : > { %v1878_v17 = vpop.f32.mrf.mxu1  ;;  %v1168_v29 = vsel %vm893_vm9, %v2307_v18, -inf }
 0x1b9   : > { %v2311_v19 = vsel %vm1107_vm7, %v1878_v17, -1e+30 }
 0x1ba   : > { %v1178_v24 = vsel %vm893_vm9, %v2311_v19, -inf  ;;  %v955_v25 = vpop.f32.mrf.mxu1 }
 0x1bb   : > { %v1179_v27 = vmax.f32 %v1177_v23, %v1178_v24  ;;  %v2323_v28 = vsel %vm1105_vm10, %v955_v25, -1e+30 }
 0x1bc   : > { %v1169_v30 = vsel %vm893_vm9, %v2323_v28, -inf  ;;  %v1881_v31 = vpop.f32.mrf.mxu1 }
 0x1bd   : > { %v1180_v32 = vrot.slane %v1179_v27, 4  ;;  %v1170_v33 = vmax.f32 %v1168_v29, %v1169_v30  ;;  %v2333_v37 = vsel %vm1110_vm11, %v1881_v31, -1e+30 }
 0x1be   : > { %v968_v34 = vpop.f32.mrf.mxu1  ;;  %v1195_v55 = vsel %vm893_vm9, %v2333_v37, -inf }
 0x1bf   : > { %v1181_v35 = vmax.f32 %v1179_v27, %v1180_v32  ;;  %v1171_v36 = vrot.slane %v1170_v33, 4  ;;  %v2342_v43 = vsel %vm1108_vm13, %v968_v34, -1e+30 }
 0x1c0   : > { %v1882_v40 = vpop.f32.mrf.mxu1  ;;  %v1186_v51 = vsel %vm893_vm9, %v2342_v43, -inf }
 0x1c1   : > { %v1182_v41 = vrot.slane %v1181_v35, 2  ;;  %v1172_v42 = vmax.f32 %v1170_v33, %v1171_v36  ;;  %v2346_v44 = vsel %vm1111_vm12, %v1882_v40, -1e+30 }
 0x1c2   : > { %v1196_v45 = vsel %vm893_vm9, %v2346_v44, -inf  ;;  %v971_v46 = vpop.f32.mrf.mxu1 }
 0x1c3   : > { %v1183_v47 = vmax.f32 %v1181_v35, %v1182_v41  ;;  %v1173_v48 = vrot.slane %v1172_v42, 2  ;;  %v1197_v49 = vmax.f32 %v1195_v55, %v1196_v45  ;;  %v2356_v50 = vsel %vm1109_vm14, %v971_v46, -1e+30 }
 0x1c4   : > { %v1187_v52 = vsel %vm893_vm9, %v2356_v50, -inf  ;;  %v1885_v53 = vpop.f32.mrf.mxu1 }
 0x1c5   : > { %v1184_v54 = vrot.slane %v1183_v47, 1  ;;  %v1174_v56 = vmax.f32 %v1172_v42, %v1173_v48  ;;  %v1198_v57 = vrot.slane %v1197_v49, 4  ;;  %v1188_v58 = vmax.f32 %v1186_v51, %v1187_v52 }
 0x1c6   : > { %v2370_v61 = vsel %vm1114_vm15, %v1885_v53, -1e+30  ;;  %v984_v62 = vpop.f32.mrf.mxu1 }
 0x1c7   : > { %v1185_v63 = vmax.f32 %v1183_v47, %v1184_v54  ;;  %v1175_v0 = vrot.slane %v1174_v56, 1  ;;  %v1199_v1 = vmax.f32 %v1197_v49, %v1198_v57  ;;  %v1189_v2 = vrot.slane %v1188_v58, 4 }
 0x1c8   : > { %v2375_v3 = vsel %vm2677_vm0, %v984_v62, -1e+30  ;;  %v1886_v14 = vpop.f32.mrf.mxu1  ;;  %v1213_v27 = vsel %vm893_vm9, %v2370_v61, -inf  ;;  %vm1117_vm0 = vcmp.gt.f32.partialorder %v2337_v39, 0.0 }
 0x1c9   : > { %v1242_v15 = vsub.f32 %v2302_v16, %v1185_v63  ;;  %v1243_v17 = vsub.f32 %v2311_v19, %v1185_v63  ;;  %v1176_v23 = vmax.f32 %v1174_v56, %v1175_v0  ;;  %v1200_v24 = vrot.slane %v1199_v1, 2 }
 0x1ca   : > { %v1190_v25 = vmax.f32 %v1188_v58, %v1189_v2  ;;  %v1204_v29 = vsel %vm893_vm9, %v2375_v3, -inf  ;;  %v2388_v30 = vsel %vm1115_vm2, %v1886_v14, -1e+30  ;;  %v987_v31 = vpop.f32.mrf.mxu1 }
 0x1cb   : > { %v1260_v32 = vmul.f32 1.442695, %v1242_v15  ;;  %v1262_v16 = vmul.f32 1.442695, %v1243_v17  ;;  %v1240_v19 = vsub.f32 %v2307_v18, %v1176_v23  ;;  %v1241_v33 = vsub.f32 %v2323_v28, %v1176_v23 }
 0x1cc   : > { %v1201_v34 = vmax.f32 %v1199_v1, %v1200_v24  ;;  %v1191_v35 = vrot.slane %v1190_v25, 2  ;;  %v1214_v36 = vsel %vm893_vm9, %v2388_v30, -inf  ;;  %v2397_v40 = vsel %vm1113_vm1, %v987_v31, -1e+30  ;;  %v1889_v41 = vpop.f32.mrf.mxu1 }
 0x1cd   : > { %1934 = vpow2.f32 %v1260_v32  ;;  %v1256_v42 = vmul.f32 1.442695, %v1240_v19  ;;  %v1258_v55 = vmul.f32 1.442695, %v1241_v33  ;;  %v1215_v45 = vmax.f32 %v1213_v27, %v1214_v36 }
 0x1ce   : > { %1936 = vpow2.f32 %v1262_v16  ;;  %v1202_v46 = vrot.slane %v1201_v34, 1  ;;  %v1192_v47 = vmax.f32 %v1190_v25, %v1191_v35  ;;  %v1205_v18 = vsel %vm893_vm9, %v2397_v40, -inf  ;;  %v1000_v28 = vpop.f32.mrf.mxu1 }
 0x1cf   : > { %1938 = vpow2.f32 %v1256_v42  ;;  %v1216_v48 = vrot.slane %v1215_v45, 4  ;;  %v1206_v49 = vmax.f32 %v1204_v29, %v1205_v18  ;;  %v2403_v51 = vsel %vm1118_vm4, %v1889_v41, -1e+30 }
 0x1d0   : > { %1940 = vpow2.f32 %v1258_v55  ;;  %v1203_v52 = vmax.f32 %v1201_v34, %v1202_v46  ;;  %v1193_v53 = vrot.slane %v1192_v47, 1  ;;  %v1231_v54 = vsel %vm893_vm9, %v2403_v51, -inf  ;;  %v1890_v56 = vpop.f32.mrf.mxu1 }
 0x1d1   : > { %v1217_v57 = vmax.f32 %v1215_v45, %v1216_v48  ;;  %v1207_v58 = vrot.slane %v1206_v49, 4  ;;  %v2409_v62 = vsel %vm1116_vm3, %v1000_v28, -1e+30  ;;  %v2413_v63 = vsel %vm1119_vm5, %v1890_v56, -1e+30 }
 0x1d2   : > { %v1246_v0 = vsub.f32 %v2333_v37, %v1203_v52  ;;  %v1247_v1 = vsub.f32 %v2346_v44, %v1203_v52  ;;  %v1194_v2 = vmax.f32 %v1192_v47, %v1193_v53  ;;  %v1222_v14 = vsel %vm893_vm9, %v2409_v62, -inf  ;;  %v1003_v15 = vpop.f32.mrf.mxu1 }
 0x1d3   : > { %v1218_v17 = vrot.slane %v1217_v57, 2  ;;  %v1208_v23 = vmax.f32 %v1206_v49, %v1207_v58  ;;  %v1232_v24 = vsel %vm893_vm9, %v2413_v63, -inf  ;;  %v2423_v25 = vsel %vm1117_vm0, %v1003_v15, -1e+30 }
 0x1d4   : > { %v1268_v27 = vmul.f32 1.442695, %v1246_v0  ;;  %v1270_v29 = vmul.f32 1.442695, %v1247_v1  ;;  %v1244_v37 = vsub.f32 %v2342_v43, %v1194_v2  ;;  %v1245_v44 = vsub.f32 %v2356_v50, %v1194_v2 }
 0x1d5   : > { %v1219_v31 = vmax.f32 %v1217_v57, %v1218_v17  ;;  %v1209_v32 = vrot.slane %v1208_v23, 2  ;;  %v1233_v16 = vmax.f32 %v1231_v54, %v1232_v24  ;;  %v1223_v19 = vsel %vm893_vm9, %v2423_v25, -inf }
 0x1d6   : > { %1942 = vpow2.f32 %v1268_v27  ;;  %v1264_v33 = vmul.f32 1.442695, %v1244_v37  ;;  %v1266_v34 = vmul.f32 1.442695, %v1245_v44  ;;  %v1224_v35 = vmax.f32 %v1222_v14, %v1223_v19 }
 0x1d7   : > { %1944 = vpow2.f32 %v1270_v29  ;;  %v1220_v36 = vrot.slane %v1219_v31, 1  ;;  %v1210_v41 = vmax.f32 %v1208_v23, %v1209_v32  ;;  %v1234_v42 = vrot.slane %v1233_v16, 4 }
 0x1d8   : > { %1946 = vpow2.f32 %v1264_v33  ;;  %v1225_v55 = vrot.slane %v1224_v35, 4 }
 0x1d9   : > { %1948 = vpow2.f32 %v1266_v34  ;;  %v1221_v43 = vmax.f32 %v1219_v31, %v1220_v36  ;;  %v1211_v45 = vrot.slane %v1210_v41, 1  ;;  %v1235_v50 = vmax.f32 %v1233_v16, %v1234_v42 }
 0x1da   : > { %v1935_v46 = vpop.eup %1934  ;;  %v1226_v47 = vmax.f32 %v1224_v35, %v1225_v55 }
 0x1db   : > { %v1937_v18 = vpop.eup %1936  ;;  %v2431_v28 = vsel %vm1106_vm6, %v1935_v46, 0.0  ;;  %v1250_v48 = vsub.f32 %v2370_v61, %v1221_v43  ;;  %v1251_v49 = vsub.f32 %v2388_v30, %v1221_v43  ;;  %v1212_v52 = vmax.f32 %v1210_v41, %v1211_v45 }
 0x1dc   : > { %v1939_v53 = vpop.eup %1938  ;;  %v2437_v54 = vsel %vm1107_vm7, %v1937_v18, 0.0  ;;  %v1313_v56 = vsel %vm893_vm9, %v2431_v28, 0.0  ;;  %v1236_v57 = vrot.slane %v1235_v50, 2  ;;  %v1227_v58 = vrot.slane %v1226_v47, 2 }
 0x1dd   : > { %v1941_v0 = vpop.eup %1940  ;;  %v1314_v4 = vsel %vm893_vm9, %v2437_v54, 0.0  ;;  %v2445_v61 = vsel %vm1104_vm8, %v1939_v53, 0.0  ;;  %v1276_v30 = vmul.f32 1.442695, %v1250_v48  ;;  %v1278_v1 = vmul.f32 1.442695, %v1251_v49 }
 0x1de   : > { %v1315_v2 = vadd.f32 %v1314_v4, %v1313_v56  ;;  %v2449_v6 = vsel %vm1105_vm10, %v1941_v0, 0.0  ;;  %v1304_v14 = vsel %vm893_vm9, %v2445_v61, 0.0  ;;  %v1248_v15 = vsub.f32 %v2375_v3, %v1212_v52 }
 0x1df   : > { %v1305_v17 = vsel %vm893_vm9, %v2449_v6, 0.0  ;;  %1950 = vpow2.f32 %v1276_v30  ;;  %v1249_v8 = vsub.f32 %v2397_v40, %v1212_v52  ;;  %v1237_v23 = vmax.f32 %v1235_v50, %v1236_v57 }
 0x1e0   : > { %v1316_v24 = vrot.slane %v1315_v2, 4  ;;  %v1306_v27 = vadd.f32 %v1305_v17, %v1304_v14  ;;  %1952 = vpow2.f32 %v1278_v1  ;;  %v1272_v29 = vmul.f32 1.442695, %v1248_v15 }
 0x1e1   : > { %v1274_v37 = vmul.f32 1.442695, %v1249_v8  ;;  %v1238_v9 = vrot.slane %v1237_v23, 1  ;;  %v1228_v44 = vmax.f32 %v1226_v47, %v1227_v58  ;;  %vm2684_vm6 = vcmp.gt.f32.partialorder %v2293_v12, 0.0 }
 0x1e2   : > { %v1317_v31 = vadd.f32 %v1316_v24, %v1315_v2  ;;  %v1307_v32 = vrot.slane %v1306_v27, 4  ;;  %1954 = vpow2.f32 %v1272_v29  ;;  %vm1528_vm7 = vcmask 1041409  }
 0x1e3   : > { %v1943_v16 = vpop.eup %1942  ;;  %1956 = vpow2.f32 %v1274_v37  ;;  %v1239_v3 = vmax.f32 %v1237_v23, %v1238_v9  ;;  %v1229_v35 = vrot.slane %v1228_v44, 1  ;;  %vm1531_vm8 = vcmask 1042434  }
 0x1e4   : > { %v1945_v19 = vpop.eup %1944  ;;  %v1318_v33 = vrot.slane %v1317_v31, 2  ;;  %v1308_v34 = vadd.f32 %v1307_v32, %v1306_v27  ;;  %v2459_v40 = vsel %vm1110_vm11, %v1943_v16, 0.0  ;;  %vm1534_vm10 = vcmask 1043459  }
 0x1e5   : > { %v1947_v36 = vpop.eup %1946  ;;  %v2463_v41 = vsel %vm1111_vm12, %v1945_v19, 0.0  ;;  %v1331_v42 = vsel %vm893_vm9, %v2459_v40, 0.0  ;;  %v1254_v55 = vsub.f32 %v2403_v51, %v1239_v3  ;;  %v1255_v43 = vsub.f32 %v2413_v63, %v1239_v3 }
 0x1e6   : > { %v1949_v45 = vpop.eup %1948  ;;  %v1319_v50 = vadd.f32 %v1318_v33, %v1317_v31  ;;  %v1309_v46 = vrot.slane %v1308_v34, 2  ;;  %v1332_v10 = vsel %vm893_vm9, %v2463_v41, 0.0  ;;  %v2473_v47 = vsel %vm1108_vm13, %v1947_v36, 0.0 }
 0x1e7   : > { %v1333_v11 = vadd.f32 %v1332_v10, %v1331_v42  ;;  %v2477_v18 = vsel %vm1109_vm14, %v1949_v45, 0.0  ;;  %v1322_v51 = vsel %vm893_vm9, %v2473_v47, 0.0  ;;  %v1284_v48 = vmul.f32 1.442695, %v1254_v55 }
 0x1e8   : > { %v1320_v63 = vrot.slane %v1319_v50, 1  ;;  %v1310_v49 = vadd.f32 %v1309_v46, %v1308_v34  ;;  %v1323_v52 = vsel %vm893_vm9, %v2477_v18, 0.0  ;;  %v1286_v53 = vmul.f32 1.442695, %v1255_v43 }
 0x1e9   : > { %v1334_v56 = vrot.slane %v1333_v11, 4  ;;  %v1324_v57 = vadd.f32 %v1323_v52, %v1322_v51  ;;  %1958 = vpow2.f32 %v1284_v48  ;;  %v1230_v5 = vmax.f32 %v1228_v44, %v1229_v35 }
 0x1ea   : > { %v1321_v58 = vadd.f32 %v1320_v63, %v1319_v50  ;;  %v1311_v0 = vrot.slane %v1310_v49, 1  ;;  %1960 = vpow2.f32 %v1286_v53  ;;  %vm1537_vm11 = vcmask 1044484  }
 0x1eb   : > { %v1335_v7 = vadd.f32 %v1334_v56, %v1333_v11  ;;  %v1325_v4 = vrot.slane %v1324_v57, 4  ;;  %v1252_v30 = vsub.f32 %v2409_v62, %v1230_v5  ;;  %v1253_v15 = vsub.f32 %v2423_v25, %v1230_v5 }
 0x1ec   : > { %v1951_v1 = vpop.eup %1950  ;;  %v1377_v2 = vmax.f32 %v1321_v58, 1e-20  ;;  %v1312_v14 = vadd.f32 %v1311_v0, %v1310_v49  ;;  %vm1540_vm12 = vcmask 1045509   ;;  %vm1543_vm13 = vcmask 1046534  }
 0x1ed   : > { %v1953_v17 = vpop.eup %1952  ;;  %v1336_v8 = vrot.slane %v1335_v7, 2  ;;  %v1326_v23 = vadd.f32 %v1325_v4, %v1324_v57  ;;  %v2487_v24 = vsel %vm1114_vm15, %v1951_v1, 0.0  ;;  %v1280_v27 = vmul.f32 1.442695, %v1252_v30 }
 0x1ee   : > { %1962 = vrcp.f32 %v1377_v2  ;;  %v2491_v29 = vsel %vm1115_vm2, %v1953_v17, 0.0  ;;  %v1349_v62 = vsel %vm893_vm9, %v2487_v24, 0.0  ;;  %v1376_v9 = vmax.f32 %v1312_v14, 1e-20 }
 0x1ef   : > { %v1955_v37 = vpop.eup %1954  ;;  %v1337_v44 = vadd.f32 %v1336_v8, %v1335_v7  ;;  %v1327_v25 = vrot.slane %v1326_v23, 2  ;;  %v1350_v31 = vsel %vm893_vm9, %v2491_v29, 0.0  ;;  %1964 = vpow2.f32 %v1280_v27 }
 0x1f0   : > { %v1957_v32 = vpop.eup %1956  ;;  %v1351_v20 = vadd.f32 %v1350_v31, %v1349_v62  ;;  %v2499_v16 = vsel %vm2684_vm6, %v1955_v37, 0.0  ;;  %v1282_v21 = vmul.f32 1.442695, %v1253_v15  ;;  %vm1546_vm14 = vcmask 1047559  }
 0x1f1   : > { %v1338_v3 = vrot.slane %v1337_v44, 1  ;;  %v1328_v19 = vadd.f32 %v1327_v25, %v1326_v23  ;;  %v2503_v33 = vsel %vm1113_vm1, %v1957_v32, 0.0  ;;  %v1340_v34 = vsel %vm893_vm9, %v2499_v16, 0.0 }
 0x1f2   : > { %v1352_v35 = vrot.slane %v1351_v20, 4  ;;  %v1341_v36 = vsel %vm893_vm9, %v2503_v33, 0.0  ;;  %1966 = vpow2.f32 %v1282_v21 }
 0x1f3   : > { %v1339_v42 = vadd.f32 %v1338_v3, %v1337_v44  ;;  %v1329_v12 = vrot.slane %v1328_v19, 1  ;;  %v1342_v55 = vadd.f32 %v1341_v36, %v1340_v34  ;;  %1968 = vrcp.f32 %v1376_v9 }
 0x1f4   : > { %v1353_v43 = vadd.f32 %v1352_v35, %v1351_v20 }
 0x1f5   : > { %v1379_v45 = vmax.f32 %v1339_v42, 1e-20  ;;  %v1330_v50 = vadd.f32 %v1329_v12, %v1328_v19  ;;  %v1343_v46 = vrot.slane %v1342_v55, 4 }
 0x1f6   : > { %v1959_v10 = vpop.eup %1958  ;;  %v1354_v13 = vrot.slane %v1353_v43, 2 }
 0x1f7   : > { %v1961_v11 = vpop.eup %1960  ;;  %1970 = vrcp.f32 %v1379_v45  ;;  %v1378_v51 = vmax.f32 %v1330_v50, 1e-20  ;;  %v1344_v48 = vadd.f32 %v1343_v46, %v1342_v55  ;;  %v2511_v63 = vsel %vm1118_vm4, %v1959_v10, 0.0 }
 0x1f8   : > { %v1355_v49 = vadd.f32 %v1354_v13, %v1353_v43  ;;  %v2515_v52 = vsel %vm1119_vm5, %v1961_v11, 0.0  ;;  %v1367_v53 = vsel %vm893_vm9, %v2511_v63, 0.0 }
 0x1f9   : > { %1972 = vrcp.f32 %v1378_v51  ;;  %v1345_v56 = vrot.slane %v1344_v48, 2  ;;  %v1368_v57 = vsel %vm893_vm9, %v2515_v52, 0.0 }
 0x1fa   : > { %v1356_v5 = vrot.slane %v1355_v49, 1  ;;  %v1369_v58 = vadd.f32 %v1368_v57, %v1367_v53 }
 0x1fb   : > { %v1963_v0 = vpop.eup %1962  ;;  %v1346_v7 = vadd.f32 %v1345_v56, %v1344_v48 }
 0x1fc   : > { %v1357_v59 = vadd.f32 %v1356_v5, %v1355_v49  ;;  %v1370_v4 = vrot.slane %v1369_v58, 4  ;;  %v1965_v30 = vpop.eup %1964  ;;  %v1394_v62 = vmul.f32 %v1963_v0, %v2431_v28  ;;  %v1395_v9 = vmul.f32 %v1963_v0, %v2437_v54 }
 0x1fd   : > { %v1347_v1 = vrot.slane %v1346_v7, 1  ;;  %v2523_v17 = vsel %vm1116_vm3, %v1965_v30, 0.0 }
 0x1fe   : > { %v1381_v60 = vmax.f32 %v1357_v59, 1e-20  ;;  %v1371_v15 = vadd.f32 %v1370_v4, %v1369_v58  ;;  %v1358_v25 = vsel %vm893_vm9, %v2523_v17, 0.0  ;;  %v1410_v3 = vmul.f32 %v1394_v62, %v2241_v22 }
 0x1ff   : > { %v1967_v2 = vpop.eup %1966  ;;  %v1348_v14 = vadd.f32 %v1347_v1, %v1346_v7  ;;  %v1411_v54 = vmul.f32 %v1395_v9, %v2244_v26 }
 0x200   : > { %1974 = vrcp.f32 %v1381_v60  ;;  %v1372_v23 = vrot.slane %v1371_v15, 2  ;;  %v1969_v27 = vpop.eup %1968  ;;  %v2528_v37 = vsel %vm1117_vm0, %v1967_v2, 0.0  ;;  %v1433_v50 = vsel %vm893_vm9, %v1410_v3, 0.0 }
 0x201   : > { %v1380_v8 = vmax.f32 %v1348_v14, 1e-20  ;;  %v1359_v31 = vsel %vm893_vm9, %v2528_v37, 0.0  ;;  %v1392_v32 = vmul.f32 %v1969_v27, %v2445_v61  ;;  %v1393_v20 = vmul.f32 %v1969_v27, %v2449_v6 }
 0x202   : > { %v1373_v44 = vadd.f32 %v1372_v23, %v1371_v15  ;;  %v1360_v39 = vadd.f32 %v1359_v31, %v1358_v25 }
 0x203   : > { %1976 = vrcp.f32 %v1380_v8  ;;  %v1408_v12 = vmul.f32 %v1392_v32, %v2241_v22  ;;  %v1409_v61 = vmul.f32 %v1393_v20, %v2244_v26 }
 0x204   : > { %v1971_v38 = vpop.eup %1970  ;;  %v1374_v21 = vrot.slane %v1373_v44, 1  ;;  %v1361_v42 = vrot.slane %v1360_v39, 4 }
 0x205   : > { %v1398_v19 = vmul.f32 %v1971_v38, %v2459_v40  ;;  %v1399_v6 = vmul.f32 %v1971_v38, %v2463_v41  ;;  %v1434_v40 = vsel %vm893_vm9, %v1411_v54, 0.0  ;;  %v1424_v13 = vsel %vm893_vm9, %v1408_v12, 0.0 }
 0x206   : > { %v1973_v28 = vpop.eup %1972  ;;  %v1375_v36 = vadd.f32 %v1374_v21, %v1373_v44  ;;  %v1425_v41 = vsel %vm893_vm9, %v1409_v61, 0.0  ;;  %v1435_v49 = vadd.f32 %v1434_v40, %v1433_v50 }
 0x207   : > { %v1396_v34 = vmul.f32 %v1973_v28, %v2473_v47  ;;  %v1397_v35 = vmul.f32 %v1973_v28, %v2477_v18  ;;  %v1362_v47 = vadd.f32 %v1361_v42, %v1360_v39  ;;  %v1414_v18 = vmul.f32 %v1398_v19, %v2241_v22 }
 0x208   : > { %v1383_v45 = vmax.f32 %v1375_v36, 1e-20  ;;  %v1415_v11 = vmul.f32 %v1399_v6, %v2244_v26  ;;  %v1426_v0 = vadd.f32 %v1425_v41, %v1424_v13  ;;  %v1436_v2 = vrot.slane %v1435_v49, 4 }
 0x209   : > { %v1412_v55 = vmul.f32 %v1396_v34, %v2241_v22  ;;  %v1413_v43 = vmul.f32 %v1397_v35, %v2244_v26  ;;  %v1363_v51 = vrot.slane %v1362_v47, 2  ;;  %v1451_v7 = vsel %vm893_vm9, %v1414_v18, 0.0 }
 0x20a   : > { %1978 = vrcp.f32 %v1383_v45  ;;  %v1452_v59 = vsel %vm893_vm9, %v1415_v11, 0.0  ;;  %v1427_v27 = vrot.slane %v1426_v0, 4  ;;  %v1437_v25 = vadd.f32 %v1436_v2, %v1435_v49 }
 0x20b   : > { %v1442_v46 = vsel %vm893_vm9, %v1412_v55, 0.0  ;;  %v1443_v10 = vsel %vm893_vm9, %v1413_v43, 0.0  ;;  %v1364_v5 = vadd.f32 %v1363_v51, %v1362_v47  ;;  %v1453_v15 = vadd.f32 %v1452_v59, %v1451_v7  ;;  %v1810_v59 = vld [vmem:[%s2673_s9] ss:$0 sm:$0xff] }
 0x20c   : > { %v1444_v53 = vadd.f32 %v1443_v10, %v1442_v46  ;;  %v1428_v21 = vadd.f32 %v1427_v27, %v1426_v0  ;;  %v1438_v3 = vrot.slane %v1437_v25, 2 }
 0x20d   : > { %v1975_v48 = vpop.eup %1974  ;;  %v1365_v14 = vrot.slane %v1364_v5, 1  ;;  %v1454_v32 = vrot.slane %v1453_v15, 4 }
 0x20e   : > { %v1402_v56 = vmul.f32 %v1975_v48, %v2487_v24  ;;  %v1403_v57 = vmul.f32 %v1975_v48, %v2491_v29  ;;  %v1445_v24 = vrot.slane %v1444_v53, 4  ;;  %v1429_v6 = vrot.slane %v1428_v21, 2 }
 0x20f   : > { %v1366_v23 = vadd.f32 %v1365_v14, %v1364_v5  ;;  %v1455_v12 = vadd.f32 %v1454_v32, %v1453_v15  ;;  %v1439_v55 = vadd.f32 %v1438_v3, %v1437_v25 }
 0x210   : > { %v1977_v58 = vpop.eup %1976  ;;  %v1418_v4 = vmul.f32 %v1402_v56, %v2241_v22  ;;  %v1419_v30 = vmul.f32 %v1403_v57, %v2244_v26 }
 0x211   : > { %v1400_v1 = vmul.f32 %v1977_v58, %v2499_v16  ;;  %v1401_v60 = vmul.f32 %v1977_v58, %v2503_v33  ;;  %v1382_v38 = vmax.f32 %v1366_v23, 1e-20  ;;  %v1446_v33 = vadd.f32 %v1445_v24, %v1444_v53 }
 0x212   : > { %v1470_v62 = vsel %vm893_vm9, %v1419_v30, 0.0  ;;  %v1469_v44 = vsel %vm893_vm9, %v1418_v4, 0.0  ;;  %v1440_v10 = vrot.slane %v1439_v55, 1 }
 0x213   : > { %v1416_v29 = vmul.f32 %v1400_v1, %v2241_v22  ;;  %v1417_v8 = vmul.f32 %v1401_v60, %v2244_v26  ;;  %1980 = vrcp.f32 %v1382_v38  ;;  %v1471_v20 = vadd.f32 %v1470_v62, %v1469_v44 }
 0x214   : > { %v1447_v34 = vrot.slane %v1446_v33, 2  ;;  %v1441_v5 = vadd.f32 %v1440_v10, %v1439_v55 }
 0x215   : > { %v1460_v9 = vsel %vm893_vm9, %v1416_v29, 0.0  ;;  %v1461_v16 = vsel %vm893_vm9, %v1417_v8, 0.0  ;;  %v1472_v61 = vrot.slane %v1471_v20, 4 }
 0x216   : > { %v1462_v31 = vadd.f32 %v1461_v16, %v1460_v9  ;;  %v1448_v50 = vadd.f32 %v1447_v34, %v1446_v33  ;;  %v2584_v24 = vadd.f32 %v1810_v59, %v1441_v5 }
 0x217   : > { %v1979_v28 = vpop.eup %1978  ;;  %v1473_v18 = vadd.f32 %v1472_v61, %v1471_v20 }
 0x218   : > { %v1463_v39 = vrot.slane %v1462_v31, 4  ;;  %v1407_v54 = vmul.f32 %v1979_v28, %v2515_v52  ;;  %v1406_v19 = vmul.f32 %v1979_v28, %v2511_v63  ;;  %v1456_v52 = vrot.slane %v1455_v12, 2 }
 0x219   : > { %v1430_v63 = vadd.f32 %v1429_v6, %v1428_v21  ;;  %v1449_v13 = vrot.slane %v1448_v50, 1  ;;  %v1474_v48 = vrot.slane %v1473_v18, 2 }
 0x21a   : > { %v1464_v35 = vadd.f32 %v1463_v39, %v1462_v31  ;;  %v1422_v36 = vmul.f32 %v1406_v19, %v2241_v22  ;;  %v1423_v42 = vmul.f32 %v1407_v54, %v2244_v26  ;;  %v1457_v51 = vadd.f32 %v1456_v52, %v1455_v12 }
 0x21b   : > { %v1431_v53 = vrot.slane %v1430_v63, 1  ;;  %v1450_v0 = vadd.f32 %v1449_v13, %v1448_v50  ;;  %v1475_v2 = vadd.f32 %v1474_v48, %v1473_v18 }
 0x21c   : > { %v1487_v43 = vsel %vm893_vm9, %v1422_v36, 0.0  ;;  %v1488_v45 = vsel %vm893_vm9, %v1423_v42, 0.0  ;;  %v1465_v40 = vrot.slane %v1464_v35, 2  ;;  %v1458_v1 = vrot.slane %v1457_v51, 1 }
 0x21d   : > { %v1489_v47 = vadd.f32 %v1488_v45, %v1487_v43  ;;  %v1432_v60 = vadd.f32 %v1431_v53, %v1430_v63  ;;  %v1505_v8 = vadd.f32 %v1810_v59, %v1450_v0  ;;  %v1476_v27 = vrot.slane %v1475_v2, 1 }
 0x21e   : > { %v1466_v41 = vadd.f32 %v1465_v40, %v1464_v35  ;;  %v1459_v23 = vadd.f32 %v1458_v1, %v1457_v51 }
 0x21f   : > { %v1490_v46 = vrot.slane %v1489_v47, 4  ;;  %v1513_v16 = vmax.f32 %v1505_v8, 0.0  ;;  %v1477_v38 = vadd.f32 %v1476_v27, %v1475_v2 }
 0x220   : > { %v1981_v49 = vpop.eup %1980  ;;  %v1467_v7 = vrot.slane %v1466_v41, 1  ;;  %v1506_v33 = vadd.f32 %v1810_v59, %v1459_v23 }
 0x221   : > { %v1491_v11 = vadd.f32 %v1490_v46, %v1489_v47  ;;  %v1404_v56 = vmul.f32 %v1981_v49, %v2523_v17  ;;  %v1405_v57 = vmul.f32 %v1981_v49, %v2528_v37  ;;  %v1530_v3 = vrot.slane %v1513_v16, 6 }
 0x222   : > { %v1468_v29 = vadd.f32 %v1467_v7, %v1466_v41  ;;  %v1508_v54 = vadd.f32 %v1810_v59, %v1477_v38  ;;  %v1514_v19 = vmax.f32 %v1506_v33, 0.0 }
 0x223   : > { %v1492_v58 = vrot.slane %v1491_v11, 2  ;;  %v1421_v4 = vmul.f32 %v1405_v57, %v2244_v26  ;;  %v1420_v30 = vmul.f32 %v1404_v56, %v2241_v22  ;;  %v1503_v26 = vadd.f32 %v1810_v59, %v1432_v60 }
 0x224   : > { %v1512_v22 = vmax.f32 %v2584_v24, 0.0  ;;  %v1507_v25 = vadd.f32 %v1810_v59, %v1468_v29  ;;  %v1516_v6 = vmax.f32 %v1508_v54, 0.0  ;;  %v1533_v55 = vrot.slane %v1514_v19, 5 }
 0x225   : > { %v1478_v14 = vsel %vm893_vm9, %v1420_v30, 0.0  ;;  %v1479_v17 = vsel %vm893_vm9, %v1421_v4, 0.0  ;;  %v1493_v37 = vadd.f32 %v1492_v58, %v1491_v11  ;;  %v1511_v20 = vmax.f32 %v1503_v26, 0.0 }
 0x226   : > { %v1480_v15 = vadd.f32 %v1479_v17, %v1478_v14  ;;  %v1527_v28 = vrot.slane %v1512_v22, 7  ;;  %v1515_v39 = vmax.f32 %v1507_v25, 0.0  ;;  %v1539_v52 = vrot.slane %v1516_v6, 3 }
 0x227   : > { %v1494_v9 = vrot.slane %v1493_v37, 1 }
 0x228   : > { %v1481_v62 = vrot.slane %v1480_v15, 4  ;;  %v1529_v36 = vsel %vm1528_vm7, %v1527_v28, %v1511_v20  ;;  %v1536_v61 = vrot.slane %v1515_v39, 4 }
 0x229   : > { %v1495_v32 = vadd.f32 %v1494_v9, %v1493_v37  ;;  %v1532_v12 = vsel %vm1531_vm8, %v1530_v3, %v1529_v36 }
 0x22a   : > { %v1482_v44 = vadd.f32 %v1481_v62, %v1480_v15  ;;  %v1535_v50 = vsel %vm1534_vm10, %v1533_v55, %v1532_v12  ;;  %v1811_v12 = vld [vmem:[%s2674_s10] ss:$0 sm:$0xff] }
 0x22b   : > { %v1510_v35 = vadd.f32 %v1810_v59, %v1495_v32  ;;  %v1538_v47 = vsel %vm1537_vm11, %v1536_v61, %v1535_v50 }
 0x22c   : > { %v1483_v31 = vrot.slane %v1482_v44, 2  ;;  %v1541_v63 = vsel %vm1540_vm12, %v1539_v52, %v1538_v47 }
 0x22d   : > { %v1518_v45 = vmax.f32 %v1510_v35, 0.0 }
 0x22e   : > { %v1484_v21 = vadd.f32 %v1483_v31, %v1482_v44 }
 0x22f   : > { %v1545_v46 = vrot.slane %v1518_v45, 1 }
 0x230   : > { %v1485_v34 = vrot.slane %v1484_v21, 1 }
 0x232   : > { %v1486_v42 = vadd.f32 %v1485_v34, %v1484_v21 }
 0x234   : > { %v1509_v43 = vadd.f32 %v1810_v59, %v1486_v42 }
 0x236   : > { %v1517_v40 = vmax.f32 %v1509_v43, 0.0 }
 0x238   : > { %v1542_v18 = vrot.slane %v1517_v40, 2 }
 0x23a   : > { %v1544_v10 = vsel %vm1543_vm13, %v1542_v18, %v1541_v63 }
 0x23b   : > { %v1547_v13 = vsel %vm1546_vm14, %v1545_v46, %v1544_v10 }
 0x23c   : > { %v1549_v41 = vsel %vm893_vm9, %v1547_v13, 0.0 }
 0x23d   : > { %1550 = vadd.xlane.f32.xlu0 %v1549_v41 }
 0x2c6   : > { %v1551_v11 = vpop.xlane.xlu0 %1550 }
 0x2c7   : > { %v1553_v51 = vmul.f32 0.03125, %v1551_v11 }
 0x2c9   : > { %v1555_v48 = vrot.slane %v1553_v51, 1  ;;  %v1556_v49 = vrot.slane %v1553_v51, 2  ;;  %v1557_v53 = vrot.slane %v1553_v51, 3  ;;  %v1558_v56 = vrot.slane %v1553_v51, 4 }
 0x2ca   : > { %v1559_v57 = vrot.slane %v1553_v51, 5  ;;  %v1560_v5 = vrot.slane %v1553_v51, 6  ;;  %v1561_v58 = vrot.slane %v1553_v51, 7  ;;  %v1570_v0 = vsub.f32 %v1511_v20, %v1553_v51 }
 0x2cb   : > { %v1571_v7 = vsub.f32 %v1512_v22, %v1555_v48  ;;  %v1572_v59 = vsub.f32 %v1513_v16, %v1556_v49  ;;  %v1573_v4 = vsub.f32 %v1514_v19, %v1557_v53  ;;  %v1574_v30 = vsub.f32 %v1515_v39, %v1558_v56  ;;  %v1812_v49 = vld [vmem:[%s2675_s11] ss:$0 sm:$0xff] }
 0x2cc   : > { %v1575_v1 = vsub.f32 %v1516_v6, %v1559_v57  ;;  %v1576_v2 = vsub.f32 %v1517_v40, %v1560_v5  ;;  %v1577_v60 = vsub.f32 %v1518_v45, %v1561_v58  ;;  %v1578_v29 = vmul.f32 %v1570_v0, %v1570_v0 }
 0x2cd   : > { %v1579_v14 = vmul.f32 %v1571_v7, %v1571_v7  ;;  %v1580_v17 = vmul.f32 %v1572_v59, %v1572_v59  ;;  %v1581_v37 = vmul.f32 %v1573_v4, %v1573_v4  ;;  %v1582_v24 = vmul.f32 %v1574_v30, %v1574_v30 }
 0x2ce   : > { %v1583_v15 = vmul.f32 %v1575_v1, %v1575_v1  ;;  %v1584_v27 = vmul.f32 %v1576_v2, %v1576_v2  ;;  %v1585_v62 = vmul.f32 %v1577_v60, %v1577_v60 }
 0x2cf   : > { %v1594_v8 = vrot.slane %v1579_v14, 7  ;;  %v1596_v23 = vrot.slane %v1580_v17, 6  ;;  %v1598_v26 = vrot.slane %v1581_v37, 5  ;;  %v1600_v44 = vrot.slane %v1582_v24, 4 }
 0x2d0   : > { %v1602_v16 = vrot.slane %v1583_v15, 3  ;;  %v1604_v33 = vrot.slane %v1584_v27, 2  ;;  %v1606_v32 = vrot.slane %v1585_v62, 1 }
 0x2d1   : > { %v1595_v9 = vsel %vm1528_vm7, %v1594_v8, %v1578_v29 }
 0x2d2   : > { %v1597_v22 = vsel %vm1531_vm8, %v1596_v23, %v1595_v9 }
 0x2d3   : > { %v1599_v25 = vsel %vm1534_vm10, %v1598_v26, %v1597_v22 }
 0x2d4   : > { %v1601_v38 = vsel %vm1537_vm11, %v1600_v44, %v1599_v25 }
 0x2d5   : > { %v1603_v31 = vsel %vm1540_vm12, %v1602_v16, %v1601_v38 }
 0x2d6   : > { %v1605_v20 = vsel %vm1543_vm13, %v1604_v33, %v1603_v31 }
 0x2d7   : > { %v1607_v28 = vsel %vm1546_vm14, %v1606_v32, %v1605_v20 }
 0x2d8   : > { %v1609_v21 = vsel %vm893_vm9, %v1607_v28, 0.0 }
 0x2d9   : > { %1610 = vadd.xlane.f32.xlu1 %v1609_v21 }
 0x362   : > { %v1611_v39 = vpop.xlane.xlu1 %1610 }
 0x363   : > { %v1612_v3 = vmul.f32 0.03125, %v1611_v39 }
 0x365   : > { %v1613_v54 = vadd.f32 1e-05, %v1612_v3 }
 0x367   : > { %1982 = vrsqrt.f32 %v1613_v54 }
 0x374   : > { %v1983_v19 = vpop.eup %1982 }
 0x375   : > { %v1616_v34 = vrot.slane %v1983_v19, 1  ;;  %v1617_v35 = vrot.slane %v1983_v19, 2  ;;  %v1618_v36 = vrot.slane %v1983_v19, 3  ;;  %v1619_v42 = vrot.slane %v1983_v19, 4 }
 0x376   : > { %v1620_v61 = vrot.slane %v1983_v19, 5  ;;  %v1621_v6 = vrot.slane %v1983_v19, 6  ;;  %v1622_v55 = vrot.slane %v1983_v19, 7  ;;  %v1631_v43 = vmul.f32 %v1983_v19, %v1570_v0 }
 0x377   : > { %v1632_v45 = vmul.f32 %v1616_v34, %v1571_v7  ;;  %v1633_v50 = vmul.f32 %v1617_v35, %v1572_v59  ;;  %v1634_v40 = vmul.f32 %v1618_v36, %v1573_v4  ;;  %v1635_v47 = vmul.f32 %v1619_v42, %v1574_v30 }
 0x378   : > { %v1636_v52 = vmul.f32 %v1620_v61, %v1575_v1  ;;  %v1637_v18 = vmul.f32 %v1621_v6, %v1576_v2  ;;  %v1638_v63 = vmul.f32 %v1622_v55, %v1577_v60  ;;  %v1646_v46 = vmul.f32 %v1811_v12, %v1631_v43 }
 0x379   : > { %v1647_v10 = vmul.f32 %v1811_v12, %v1632_v45  ;;  %v1648_v13 = vmul.f32 %v1811_v12, %v1633_v50  ;;  %v1649_v41 = vmul.f32 %v1811_v12, %v1634_v40  ;;  %v1650_v11 = vmul.f32 %v1811_v12, %v1635_v47 }
 0x37a   : > { %v1651_v51 = vmul.f32 %v1811_v12, %v1636_v52  ;;  %v1652_v48 = vmul.f32 %v1811_v12, %v1637_v18  ;;  %v1653_v53 = vmul.f32 %v1811_v12, %v1638_v63  ;;  %v1661_v0 = vadd.f32 %v1812_v49, %v1646_v46 }
 0x37b   : > { %v1662_v56 = vadd.f32 %v1812_v49, %v1647_v10  ;;  %v1663_v57 = vadd.f32 %v1812_v49, %v1648_v13  ;;  %v1664_v5 = vadd.f32 %v1812_v49, %v1649_v41  ;;  %v1665_v58 = vadd.f32 %v1812_v49, %v1650_v11 }
 0x37c   : > { %v1666_v7 = vadd.f32 %v1812_v49, %v1651_v51  ;;  %v1667_v30 = vadd.f32 %v1812_v49, %v1652_v48  ;;  %v1668_v1 = vadd.f32 %v1812_v49, %v1653_v53 }
 0x37d   : > { %v1677_v59 = vrot.slane %v1662_v56, 7  ;;  %v1679_v4 = vrot.slane %v1663_v57, 6  ;;  %v1681_v60 = vrot.slane %v1664_v5, 5  ;;  %v1683_v17 = vrot.slane %v1665_v58, 4 }
 0x37e   : > { %v1685_v24 = vrot.slane %v1666_v7, 3  ;;  %v1687_v15 = vrot.slane %v1667_v30, 2  ;;  %v1689_v23 = vrot.slane %v1668_v1, 1 }
 0x37f   : > { %v1678_v2 = vsel %vm1528_vm7, %v1677_v59, %v1661_v0 }
 0x380   : > { %v1680_v14 = vsel %vm1531_vm8, %v1679_v4, %v1678_v2 }
 0x381   : > { %v1682_v37 = vsel %vm1534_vm10, %v1681_v60, %v1680_v14 }
 0x382   : > { %v1684_v29 = vsel %vm1537_vm11, %v1683_v17, %v1682_v37 }
 0x383   : > { %v1686_v8 = vsel %vm1540_vm12, %v1685_v24, %v1684_v29 }
 0x384   : > { %v1688_v27 = vsel %vm1543_vm13, %v1687_v15, %v1686_v8 }
 0x385   : > { %v1690_v62 = vsel %vm1546_vm14, %v1689_v23, %v1688_v27 }
 0x386   : > { %1692 = vst.msk [vmem:[%s422_s19] sm:$0xff] %vm893_vm9, %v1690_v62 }
 0x387   : > { %1997 = shalt.err (!%p1994_p4)
}
 0x388   : > { %s1998_s18 = scalar_lea.hbm %s2625_s28, 128  ;;  %s2002_s20 = scalar_lea.hbm %s2676_s12, 256 }
 0x389   : > { %p1999_p7 = scmp.ne.s32.totalorder %s2625_s28, %s1998_s18  ;;  %p2003_p10 = scmp.lt.s32.totalorder %s2625_s28, %s2676_s12 }
 0x38a   : > { %p2004_p11 = scmp.lt.s32.totalorder %s2002_s20, %s1998_s18 }
 0x38b   : > { %p2000_p8 = pnand %p1999_p7, %p2154_p5 }
 0x38c   : > { %p2005_p12 = por %p2004_p11, %p2003_p10 }
 0x38d   : > { %p2001_p9 = pneg %p2000_p8 }
 0x38f   : > { %p2006_p13 = pnand %p2005_p12, %p2001_p9 }
 0x391   : > { %2009 = shalt.err (!%p2006_p13)
}
 0x392   : > { %1891 = dma.vmem_to_hbm [thread:$0]  (%p2154_p5), %s1708_s3, 128, %s2625_s28, %s1694_s25  }
 0x393 PF: > { %p1897_p0 = scmp.ge.s32.totalorder %s2044_s24, 2  ;;  %s1719_s0 = sand.u32 1, %s2032_s21  }
 0x394   : > { %s1720_s15 = scalar_lea.sflag [#allocation3], %s1719_s0 }
 0x395   : > { %p1894_p1 = pnand %p1897_p0, %p2158_p6 }
 0x397   : > { %p1895_p2 = pneg %p1894_p1 }
 0x399   : > { %2027 = dma.done.wait (%p1895_p2), %s1720_s15, 128  }
 0x39a   : > { %2029 = vsyncadd (%p1895_p2), %s1720_s15, 4294967168  ;;  %p22_p3 = scmp.ge.s32.totalorder %s2141_s27, 4   ;;  %s2685_s21 = smov %s2036_s22 }
 0x39b   : > { %s2686_s22 = smov %s2040_s23  ;;  %s2687_s23 = smov %s2152_s30 }
 0x39c   : > { %s2688_s24 = smov %s2141_s27  ;;  %24 = sbr.rel (!%p22_p3) target bundleno = 6 (0x6), region = 107 }
 0x3a1   :  { %1725 = vsyncpa [#allocation3], 1 }
 0x3a2   :  { %1727 = vsyncpa [#allocation3 + $0x1], 1 }

</bundles_post_ra>
